<compile_context>
chip_gen: v7x
topology: tpu7x:2x2x1
jax: 0.10.0
libtpu: 0.0.40
codegen_flags: <defaults>
</compile_context>

<pallas_src>
import jax
import jax.numpy as jnp
from jax.experimental import pallas as pl
from jax.experimental.pallas import tpu as pltpu

_NEG = -1e30                      # finite "-inf": no inf-inf NaNs on masked cols
_IMAX = jnp.iinfo(jnp.int32).max  # sentinel for the first-occurrence argmax


# ----------------------------- score functions ------------------------------

def _score_2d(q_ref, pt_ref):
    # q: (TB, D), p^T: (D, TP) -> (TB, TP).  RHS contracted over dim 0:
    # straight (M,K)x(K,N) MXU form, no in-kernel transpose, f32 accumulation.
    return jax.lax.dot_general(
        q_ref[...], pt_ref[...],
        dimension_numbers=(((1,), (0,)), ((), ())),
        preferred_element_type=jnp.float32)


def _score_3d(q_ref, p_ref):
    # q: (TB, 1, D), p: (TB, TP, D) -> (TB, 1, TP).  Batched M=1 matmul on the
    # MXU; accumulation stays in f32 and no (TB, TP, D) f32 broadcast is ever
    # materialized (the op is memory-bound, the "wasted" MXU rows are free).
    return jax.lax.dot_general(
        q_ref[...], p_ref[...],
        dimension_numbers=(((2,), (2,)), ((0,), (0,))),
        preferred_element_type=jnp.float32)


# ----------------------------- Pallas kernel --------------------------------

def _make_kernel(score_fn, P, TP, has_partial, with_scores):
    """Streams P in tiles of TP with online softmax-max accumulators."""

    def kernel(q_ref, p_ref, *refs):
        if with_scores:
            scores_ref, prob_ref, pred_ref, m_sc, l_sc, idx_sc = refs
        else:
            prob_ref, pred_ref, m_sc, l_sc, idx_sc = refs
            scores_ref = None

        k = pl.program_id(1)                     # P (reduction) axis

        @pl.when(k == 0)
        def _init():
            m_sc[...] = jnp.full_like(m_sc, _NEG)
            l_sc[...] = jnp.zeros_like(l_sc)
            idx_sc[...] = jnp.zeros_like(idx_sc)

        s = score_fn(q_ref, p_ref)               # f32, last axis = TP

        # global column index of each score in this tile
        col = k * TP + jax.lax.broadcasted_iota(jnp.int32, s.shape, s.ndim - 1)
        if has_partial:
            # mask columns past P (only the last tile is partial); compiled
            # out entirely when P % TP == 0.
            s_m = jnp.where(col < P, s, _NEG)
        else:
            s_m = s

        tile_max = jnp.max(s_m, axis=-1, keepdims=True)
        # first (lowest global index) maximal column in this tile.
        # NOTE: iota + where + min instead of jnp.argmax -> guaranteed Mosaic
        # lowering; same first-occurrence semantics as torch.max.
        tile_arg = jnp.min(jnp.where(s_m >= tile_max, col, _IMAX),
                           axis=-1, keepdims=True)

        m_prev = m_sc[...]
        m_new = jnp.maximum(m_prev, tile_max)
        alpha = jnp.exp(m_prev - m_new)          # 0 on the first tile
        l_sc[...] = alpha * l_sc[...] + jnp.sum(jnp.exp(s_m - m_new),
                                                axis=-1, keepdims=True)
        # strict '>' keeps earlier tiles on ties => first-occurrence argmax
        idx_sc[...] = jnp.where(tile_max > m_prev, tile_arg, idx_sc[...])
        m_sc[...] = m_new

        if with_scores:
            # raw relevance scores stream straight out every tile.  Values
            # written into the Pallas padding of a partial last block are
            # clipped at writeback (do NOT pad the out_shape to TP multiples).
            scores_ref[...] = s.astype(scores_ref.dtype)

        @pl.when(k == pl.num_programs(1) - 1)
        def _finalize():
            # max(softmax) = 1/sum(exp(s - max)); argmax(softmax) = argmax(s)
            prob_ref[...] = 1.0 / l_sc[...]      # exact divide (tolerance)
            pred_ref[...] = idx_sc[...]

    return kernel


# ------------------------------- wrapper -------------------------------------

def retriever_predict(q_emb, p_embs, *, tile_p=2048, tile_b=None,
                      return_scores=True, p_already_transposed=False,
                      vmem_budget_bytes=20 * (1 << 20)):
    """Pallas version of Retriever.predict()'s numerical core.

    Returns (relevance_scores, prediction, prob) like the torch module
    (relevance_scores is None when return_scores=False).
    """
    B, D = q_emb.shape

    if p_embs.ndim == 2:
        is_3d = False
        if p_already_transposed:
            assert p_embs.shape[0] == D
            p_in = p_embs                              # (D, P)
        else:
            # Feed the kernel p^T so the per-tile dot is a plain MXU matmul.
            # TODO(synk): in retrieval serving store the corpus as (D, P) at
            # encode time so this one-off HBM transpose disappears entirely.
            p_in = p_embs.T                            # (D, P)
        P = p_in.shape[1]
        q_in = q_emb
        score_fn = _score_2d
    elif p_embs.ndim == 3:
        is_3d = True
        assert p_embs.shape[0] == B and p_embs.shape[2] == D
        P = p_embs.shape[1]
        p_in = p_embs
        q_in = q_emb.reshape(B, 1, D)                  # free XLA reshape
        score_fn = _score_3d
    else:
        raise ValueError('Invalid dimensions of passage embeddings')

    # ---- question (B) tiling: feeds the leading "parallel" grid axis --------
    if tile_b is None:
        if is_3d and B >= 16 and B % 8 == 0:
            TB = 8
            for cand in (64, 32, 16, 8):
                if cand < B and B % cand == 0:
                    TB = cand
                    break
        else:
            # 2-D (shared corpus): B-tiling re-streams p once per B tile, so it
            # only pays off on multi-core parts (v7x) -- opt in via tile_b.
            # TODO(synk): alternative for tiny B on v7x: split P into two
            # halves on a "parallel" axis and merge the (m, l, idx) online
            # softmax partials in the wrapper.
            TB = B
    else:
        TB = int(tile_b)
        if B % TB != 0 or (TB != B and TB % 8 != 0):
            raise ValueError('tile_b must divide B and be a multiple of 8')
    n_b = B // TB

    # ---- passage (P) tiling: large DMA tiles, capped by a VMEM budget -------
    in_bytes = jnp.dtype(p_in.dtype).itemsize
    q_bytes = jnp.dtype(q_in.dtype).itemsize

    def _footprint(tp):
        # double-buffered p stream + (optional) double-buffered scores block
        # + q block + headroom for scratch / semaphores (sublane padding incl.)
        p_blk = (TB * tp * D if is_3d else D * tp) * in_bytes
        sc_blk = (TB * 8 * tp if is_3d else max(TB, 8) * tp) * 4
        q_blk = max(TB, 8) * 8 * max(D, 128) * q_bytes
        n = 2 * p_blk + 2 * q_blk + 256 * 1024
        if return_scores:
            n += 2 * sc_blk
        return n

    tile_p = max(128, (int(tile_p) // 128) * 128)
    if P <= tile_p and _footprint(P) <= vmem_budget_bytes:
        TP = P                                    # single tile: block == full dim
    else:
        TP = min(tile_p, max(128, (P // 128) * 128))
        while TP > 128 and _footprint(TP) > vmem_budget_bytes:
            TP = max(128, ((TP // 2) // 128) * 128)
    n_p = pl.cdiv(P, TP)
    has_partial = (P % TP) != 0

    # Explicit scoped-VMEM limit: >= the real need, <= 48 MiB so the same
    # tiling is valid on v7x (64 MiB physical) and raises v5e's 16 MiB default.
    vmem_limit = int(min(48 << 20, max(32 << 20, _footprint(TP) + (8 << 20))))

    # ---- block specs ---------------------------------------------------------
    # TODO(synk): sweep pipeline_mode=pl.Buffered(3) on p_spec on hardware.
    if is_3d:
        q_spec = pl.BlockSpec((TB, 1, D), lambda b, k: (b, 0, 0))
        p_spec = pl.BlockSpec((TB, TP, D), lambda b, k: (b, k, 0))
        scores_spec = pl.BlockSpec((TB, 1, TP), lambda b, k: (b, 0, k))
        scores_shape = jax.ShapeDtypeStruct((B, 1, P), jnp.float32)
        red_block, red_map = (TB, 1, 1), (lambda b, k: (b, 0, 0))
        prob_shape = jax.ShapeDtypeStruct((B, 1, 1), jnp.float32)
        pred_shape = jax.ShapeDtypeStruct((B, 1, 1), jnp.int32)
        acc_shape = (TB, 1, 1)
    else:
        q_spec = pl.BlockSpec((TB, D), lambda b, k: (b, 0))
        p_spec = pl.BlockSpec((D, TP), lambda b, k: (0, k))
        scores_spec = pl.BlockSpec((TB, TP), lambda b, k: (b, k))
        scores_shape = jax.ShapeDtypeStruct((B, P), jnp.float32)
        red_block, red_map = (TB, 1), (lambda b, k: (b, 0))
        prob_shape = jax.ShapeDtypeStruct((B, 1), jnp.float32)
        pred_shape = jax.ShapeDtypeStruct((B, 1), jnp.int32)
        acc_shape = (TB, 1)

    out_specs = ((scores_spec,) if return_scores else ()) + (
        pl.BlockSpec(red_block, red_map), pl.BlockSpec(red_block, red_map))
    out_shape = ((scores_shape,) if return_scores else ()) + (prob_shape, pred_shape)

    kernel = _make_kernel(score_fn, P, TP, has_partial, return_scores)

    nbytes = lambda a: a.size * jnp.dtype(a.dtype).itemsize
    cost = pl.CostEstimate(
        flops=2 * B * P * D,
        transcendentals=B * P,
        bytes_accessed=nbytes(q_in) + nbytes(p_in)
        + (B * P * 4 if return_scores else 0) + B * 8)

    outs = pl.pallas_call(
        kernel,
        grid_spec=pltpu.PrefetchScalarGridSpec(
            num_scalar_prefetch=0,
            grid=(n_b, n_p),                          # (parallel B, arbitrary P)
            in_specs=[q_spec, p_spec],
            out_specs=out_specs,
            scratch_shapes=[pltpu.VMEM(acc_shape, jnp.float32),   # running max
                            pltpu.VMEM(acc_shape, jnp.float32),   # running denom
                            pltpu.VMEM(acc_shape, jnp.int32)]),   # running argmax
        out_shape=out_shape,
        compiler_params=pltpu.CompilerParams(
            dimension_semantics=("parallel", "arbitrary"),
            vmem_limit_bytes=vmem_limit),
        cost_estimate=cost,
    )(q_in, p_in)

    if return_scores:
        scores, prob, pred = outs
    else:
        prob, pred = outs
        scores = None

    if is_3d:
        if scores is not None:
            scores = scores.reshape(B, P)             # free bitcast reshapes
        prob = prob.reshape(B)
        pred = pred.reshape(B)
    else:
        prob = prob[:, 0]
        pred = pred[:, 0]

    # torch: return (relevance_scores, prediction, prob)
    return scores, pred, prob


# ----------------------- deterministic encoder (glue) -----------------------
# Stand-in for bert_question_encoder / bert_paragraph_encoder.
# TODO(synk): the real BERT encoders are external nn.Modules passed to __init__;
# a full transformer is out of scope here, so a deterministic embed + masked
# mean-pool + linear projection is used (plain JAX glue).

def make_encoder_params(key, vocab, hidden):
    k1, k2 = jax.random.split(key)
    emb = 0.02 * jax.random.normal(k1, (vocab, hidden), jnp.float32)
    proj = 0.02 * jax.random.normal(k2, (hidden, hidden), jnp.float32)
    return emb, proj


def encode(params, ids, am):
    emb, proj = params
    tok = emb[ids]                                       # (N, L, D)
    mask = am.astype(jnp.float32)[..., None]
    pooled = (tok * mask).sum(axis=1) / jnp.maximum(mask.sum(axis=1), 1.0)
    return pooled @ proj                                 # (N, D)


def compute_embeddings(q_params, p_params, question, passages):
    """Mirrors Retriever.compute_embeddings (no token-type inputs)."""
    h_question = encode(q_params, question['ids'], question['am'])
    if passages['ids'].ndim == 2:
        h_paragraphs = encode(p_params, passages['ids'], passages['am'])
    elif passages['ids'].ndim == 3:
        b, n, l = passages['ids'].shape
        h = encode(p_params,
                   passages['ids'].reshape(b * n, l),
                   passages['am'].reshape(b * n, l))
        h_paragraphs = h.reshape(b, n, -1)
    else:
        raise ValueError('Invalid dimensions of passage ids')
    return h_question, h_paragraphs


# ------------------------------ reference ----------------------------------

def predict_ref(q_emb, p_embs):
    hp = jax.lax.Precision.HIGHEST
    if p_embs.ndim == 2:
        s = jnp.dot(q_emb, p_embs.T, precision=hp)
    else:
        s = jnp.einsum('bd,bpd->bp', q_emb, p_embs, precision=hp)
    n = jax.nn.softmax(s, axis=1)
    return s, jnp.argmax(n, axis=1), jnp.max(n, axis=1)


def _check(scores, pred, prob, s_ref, pred_r, prob_r, *, check_scores=True):
    if check_scores:
        assert jnp.allclose(scores, s_ref, atol=1e-5, rtol=1e-5)
    assert jnp.allclose(prob, prob_r, atol=1e-5, rtol=1e-5)
    n_ref = jax.nn.softmax(s_ref, axis=1)
    picked = jnp.take_along_axis(n_ref, pred[:, None], axis=1)[:, 0]
    # index match, or an exact (precision-level) tie in the reference softmax
    assert bool(jnp.all((pred == pred_r) | (jnp.abs(picked - prob_r) <= 1e-7)))


# -------------------------------- driver ------------------------------------

if __name__ == "__main__":
    B, D = 4, 64                # questions, hidden
    Lq, Lp, V = 8, 12, 64       # question len, paragraph len, vocab
    P_SHARED = 2304             # 2-D path: 2 tiles at TP=2048 (partial last)
    P_PER_Q = 320               # 3-D path: per-question candidates

    key = jax.random.PRNGKey(0)
    kq, kp, k1, k2, k3, k4, k5 = jax.random.split(key, 7)

    q_params = make_encoder_params(kq, V, D)
    p_params = make_encoder_params(kp, V, D)

    question = {
        'ids': jax.random.randint(k1, (B, Lq), 0, V, dtype=jnp.int32),
        'am': jnp.ones((B, Lq), jnp.int32),
    }
    passages_3d = {
        'ids': jax.random.randint(k2, (B, P_PER_Q, Lp), 0, V, dtype=jnp.int32),
        'am': (jax.random.uniform(k3, (B, P_PER_Q, Lp)) > 0.2).astype(jnp.int32),
    }
    passages_2d = {
        'ids': jax.random.randint(k4, (P_SHARED, Lp), 0, V, dtype=jnp.int32),
        'am': jnp.ones((P_SHARED, Lp), jnp.int32),
    }

    q_emb, p_embs_3d = compute_embeddings(q_params, p_params, question, passages_3d)
    _, p_embs_2d = compute_embeddings(q_params, p_params, question, passages_2d)

    # --- 2-D (mm) path: default large tile (TP=2048), multi-tile + partial ---
    s2, pr2, pb2 = retriever_predict(q_emb, p_embs_2d)
    jax.block_until_ready((s2, pr2, pb2))
    _check(s2, pr2, pb2, *predict_ref(q_emb, p_embs_2d))

    # --- 3-D (bmm) path: single full tile (P <= tile_p) ---
    s3, pr3, pb3 = retriever_predict(q_emb, p_embs_3d)
    jax.block_until_ready((s3, pr3, pb3))
    _check(s3, pr3, pb3, *predict_ref(q_emb, p_embs_3d))

    # --- 3-D path with a deliberately tiny tile: code-path coverage of
    #     multi-tile streaming + masked partial tile (NOT a perf setting) ---
    s3b, pr3b, pb3b = retriever_predict(q_emb, p_embs_3d, tile_p=128)
    jax.block_until_ready((s3b, pr3b, pb3b))
    _check(s3b, pr3b, pb3b, *predict_ref(q_emb, p_embs_3d))

    # --- 2-D path, B=16, explicit question tiling (megacore "parallel" axis)
    #     and scores-free output (prob/pred only) ---
    question16 = {
        'ids': jax.random.randint(k5, (16, Lq), 0, V, dtype=jnp.int32),
        'am': jnp.ones((16, Lq), jnp.int32),
    }
    q16 = encode(q_params, question16['ids'], question16['am'])
    s16, pr16, pb16 = retriever_predict(q16, p_embs_2d, tile_b=8,
                                        return_scores=False)
    jax.block_until_ready((pr16, pb16))
    assert s16 is None
    s_ref16, pr_ref16, pb_ref16 = predict_ref(q16, p_embs_2d)
    _check(None, pr16, pb16, s_ref16, pr_ref16, pb_ref16, check_scores=False)

    print("KERNEL_OK")
</pallas_src>

<mosaic_0001>
module attributes {stable_mosaic.version = 11 : i64} {
  func.func @kernel(%arg0: i32, %arg1: i32, %arg2: memref<4x64xf32, #tpu.memory_space<vmem>>, %arg3: memref<64x2048xf32, #tpu.memory_space<vmem>>, %arg4: memref<4x2048xf32, #tpu.memory_space<vmem>>, %arg5: memref<4x1xf32, #tpu.memory_space<vmem>>, %arg6: memref<4x1xi32, #tpu.memory_space<vmem>>, %arg7: memref<4x1xf32, #tpu.memory_space<vmem>>, %arg8: memref<4x1xf32, #tpu.memory_space<vmem>>, %arg9: memref<4x1xi32, #tpu.memory_space<vmem>>) attributes {dimension_semantics = [#tpu.dimension_semantics<parallel>, #tpu.dimension_semantics<arbitrary>], iteration_bounds = array<i64: 1, 2>, scalar_prefetch = 0 : i64, scratch_operands = 3 : i64, tpu.core_type = #tpu.core_type<tc>, window_params = [{transform_indices = @transform_0, window_bounds = array<i64: 4, 64>}, {transform_indices = @transform_1, window_bounds = array<i64: 64, 2048>}, {transform_indices = @transform_2, window_bounds = array<i64: 4, 2048>}, {transform_indices = @transform_3, window_bounds = array<i64: 4, 1>}, {transform_indices = @transform_4, window_bounds = array<i64: 4, 1>}]} {
    %c0_i32 = arith.constant 0 : i32
    %0 = arith.cmpi eq, %arg1, %c0_i32 : i32
    %1 = arith.extui %0 : i1 to i32
    %c0_i32_0 = arith.constant 0 : i32
    %2 = arith.cmpi ne, %1, %c0_i32_0 : i32
    scf.if %2 {
      %cst_23 = arith.constant -1.000000e+30 : f32
      %44 = vector.broadcast %cst_23 : f32 to vector<4x1xf32>
      %c0_24 = arith.constant 0 : index
      %c0_25 = arith.constant 0 : index
      %45 = vector.load %arg7[%c0_24, %c0_25] : memref<4x1xf32, #tpu.memory_space<vmem>>, vector<4x1xf32>
      tpu.vector_store %arg7[%c0_24, %c0_25], %44 {strides = array<i32>} : memref<4x1xf32, #tpu.memory_space<vmem>>, vector<4x1xf32>,
      %cst_26 = arith.constant 0.000000e+00 : f32
      %46 = vector.broadcast %cst_26 : f32 to vector<4x1xf32>
      %c0_27 = arith.constant 0 : index
      %c0_28 = arith.constant 0 : index
      %47 = vector.load %arg8[%c0_27, %c0_28] : memref<4x1xf32, #tpu.memory_space<vmem>>, vector<4x1xf32>
      tpu.vector_store %arg8[%c0_27, %c0_28], %46 {strides = array<i32>} : memref<4x1xf32, #tpu.memory_space<vmem>>, vector<4x1xf32>,
      %c0_i32_29 = arith.constant 0 : i32
      %48 = vector.broadcast %c0_i32_29 : i32 to vector<4x1xi32>
      %c0_30 = arith.constant 0 : index
      %c0_31 = arith.constant 0 : index
      %49 = vector.load %arg9[%c0_30, %c0_31] : memref<4x1xi32, #tpu.memory_space<vmem>>, vector<4x1xi32>
      tpu.vector_store %arg9[%c0_30, %c0_31], %48 {strides = array<i32>} : memref<4x1xi32, #tpu.memory_space<vmem>>, vector<4x1xi32>,
    } else {
    }
    %c0 = arith.constant 0 : index
    %c0_1 = arith.constant 0 : index
    %3 = vector.load %arg2[%c0, %c0_1] : memref<4x64xf32, #tpu.memory_space<vmem>>, vector<4x64xf32>
    %c0_2 = arith.constant 0 : index
    %c0_3 = arith.constant 0 : index
    %4 = vector.load %arg3[%c0_2, %c0_3] : memref<64x2048xf32, #tpu.memory_space<vmem>>, vector<64x2048xf32>
    %cst = arith.constant dense<0.000000e+00> : vector<4x2048xf32>
    %5 = tpu.matmul %3, %4, %cst {dimension_numbers = #tpu.dot_dimension_numbers<[1], [0], [0], [1], [0, 0, 1, 1], [], []>} : vector<4x64xf32>, vector<64x2048xf32>, vector<4x2048xf32> -> vector<4x2048xf32>
    %c2048_i32 = arith.constant 2048 : i32
    %6 = arith.muli %arg1, %c2048_i32 : i32
    %7 = tpu.iota {dimensions = array<i32: 1>} : vector<4x2048xi32>
    %8 = vector.broadcast %6 : i32 to vector<4x2048xi32>
    %9 = arith.addi %8, %7 : vector<4x2048xi32>
    %c2304_i32 = arith.constant 2304 : i32
    %10 = vector.broadcast %c2304_i32 : i32 to vector<4x2048xi32>
    %11 = arith.cmpi slt, %9, %10 : vector<4x2048xi32>
    %cst_4 = arith.constant -1.000000e+30 : f32
    %12 = vector.broadcast %cst_4 : f32 to vector<4x2048xf32>
    %13 = arith.select %11, %5, %12 : vector<4x2048xi1>, vector<4x2048xf32>
    %cst_5 = arith.constant dense<0xFF800000> : vector<4xf32>
    %14 = vector.multi_reduction <maximumf>, %13, %cst_5 [1] : vector<4x2048xf32> to vector<4xf32>
    %15 = vector.shape_cast %14 : vector<4xf32> to vector<4x1xf32>
    %16 = vector.broadcast %15 : vector<4x1xf32> to vector<4x2048xf32>
    %17 = arith.cmpf oge, %13, %16 : vector<4x2048xf32>
    %c2147483647_i32 = arith.constant 2147483647 : i32
    %18 = vector.broadcast %c2147483647_i32 : i32 to vector<4x2048xi32>
    %19 = arith.select %17, %9, %18 : vector<4x2048xi1>, vector<4x2048xi32>
    %cst_6 = arith.constant dense<2147483647> : vector<4xi32>
    %20 = vector.multi_reduction <minsi>, %19, %cst_6 [1] : vector<4x2048xi32> to vector<4xi32>
    %21 = vector.shape_cast %20 : vector<4xi32> to vector<4x1xi32>
    %c0_7 = arith.constant 0 : index
    %c0_8 = arith.constant 0 : index
    %22 = vector.load %arg7[%c0_7, %c0_8] : memref<4x1xf32, #tpu.memory_space<vmem>>, vector<4x1xf32>
    %23 = arith.maximumf %22, %15 : vector<4x1xf32>
    %24 = arith.subf %22, %23 : vector<4x1xf32>
    %25 = math.exp %24 : vector<4x1xf32>
    %c0_9 = arith.constant 0 : index
    %c0_10 = arith.constant 0 : index
    %26 = vector.load %arg8[%c0_9, %c0_10] : memref<4x1xf32, #tpu.memory_space<vmem>>, vector<4x1xf32>
    %27 = arith.mulf %25, %26 : vector<4x1xf32>
    %28 = vector.broadcast %23 : vector<4x1xf32> to vector<4x2048xf32>
    %29 = arith.subf %13, %28 : vector<4x2048xf32>
    %30 = math.exp %29 : vector<4x2048xf32>
    %cst_11 = arith.constant dense<0.000000e+00> : vector<4xf32>
    %31 = vector.multi_reduction <add>, %30, %cst_11 [1] : vector<4x2048xf32> to vector<4xf32>
    %32 = vector.shape_cast %31 : vector<4xf32> to vector<4x1xf32>
    %33 = arith.addf %27, %32 : vector<4x1xf32>
    %c0_12 = arith.constant 0 : index
    %c0_13 = arith.constant 0 : index
    %34 = vector.load %arg8[%c0_12, %c0_13] : memref<4x1xf32, #tpu.memory_space<vmem>>, vector<4x1xf32>
    tpu.vector_store %arg8[%c0_12, %c0_13], %33 {strides = array<i32>} : memref<4x1xf32, #tpu.memory_space<vmem>>, vector<4x1xf32>,
    %35 = arith.cmpf ogt, %15, %22 : vector<4x1xf32>
    %c0_14 = arith.constant 0 : index
    %c0_15 = arith.constant 0 : index
    %36 = vector.load %arg9[%c0_14, %c0_15] : memref<4x1xi32, #tpu.memory_space<vmem>>, vector<4x1xi32>
    %37 = arith.select %35, %21, %36 : vector<4x1xi1>, vector<4x1xi32>
    %c0_16 = arith.constant 0 : index
    %c0_17 = arith.constant 0 : index
    %38 = vector.load %arg9[%c0_16, %c0_17] : memref<4x1xi32, #tpu.memory_space<vmem>>, vector<4x1xi32>
    tpu.vector_store %arg9[%c0_16, %c0_17], %37 {strides = array<i32>} : memref<4x1xi32, #tpu.memory_space<vmem>>, vector<4x1xi32>,
    %c0_18 = arith.constant 0 : index
    %c0_19 = arith.constant 0 : index
    %39 = vector.load %arg7[%c0_18, %c0_19] : memref<4x1xf32, #tpu.memory_space<vmem>>, vector<4x1xf32>
    tpu.vector_store %arg7[%c0_18, %c0_19], %23 {strides = array<i32>} : memref<4x1xf32, #tpu.memory_space<vmem>>, vector<4x1xf32>,
    %c0_20 = arith.constant 0 : index
    %c0_21 = arith.constant 0 : index
    %40 = vector.load %arg4[%c0_20, %c0_21] : memref<4x2048xf32, #tpu.memory_space<vmem>>, vector<4x2048xf32>
    tpu.vector_store %arg4[%c0_20, %c0_21], %5 {strides = array<i32>} : memref<4x2048xf32, #tpu.memory_space<vmem>>, vector<4x2048xf32>,
    %c1_i32 = arith.constant 1 : i32
    %41 = arith.cmpi eq, %arg1, %c1_i32 : i32
    %42 = arith.extui %41 : i1 to i32
    %c0_i32_22 = arith.constant 0 : i32
    %43 = arith.cmpi ne, %42, %c0_i32_22 : i32
    scf.if %43 {
      %c0_23 = arith.constant 0 : index
      %c0_24 = arith.constant 0 : index
      %44 = vector.load %arg8[%c0_23, %c0_24] : memref<4x1xf32, #tpu.memory_space<vmem>>, vector<4x1xf32>
      %cst_25 = arith.constant 1.000000e+00 : f32
      %45 = vector.broadcast %cst_25 : f32 to vector<4x1xf32>
      %46 = arith.divf %45, %44 : vector<4x1xf32>
      %c0_26 = arith.constant 0 : index
      %c0_27 = arith.constant 0 : index
      %47 = vector.load %arg5[%c0_26, %c0_27] : memref<4x1xf32, #tpu.memory_space<vmem>>, vector<4x1xf32>
      tpu.vector_store %arg5[%c0_26, %c0_27], %46 {strides = array<i32>} : memref<4x1xf32, #tpu.memory_space<vmem>>, vector<4x1xf32>,
      %c0_28 = arith.constant 0 : index
      %c0_29 = arith.constant 0 : index
      %48 = vector.load %arg9[%c0_28, %c0_29] : memref<4x1xi32, #tpu.memory_space<vmem>>, vector<4x1xi32>
      %c0_30 = arith.constant 0 : index
      %c0_31 = arith.constant 0 : index
      %49 = vector.load %arg6[%c0_30, %c0_31] : memref<4x1xi32, #tpu.memory_space<vmem>>, vector<4x1xi32>
      tpu.vector_store %arg6[%c0_30, %c0_31], %48 {strides = array<i32>} : memref<4x1xi32, #tpu.memory_space<vmem>>, vector<4x1xi32>,
    } else {
    }
    return
  }
  func.func @transform_0(%arg0: i32, %arg1: i32) -> (i32, i32) {
    %c0_i32 = arith.constant 0 : i32
    %c0_i32_0 = arith.constant 0 : i32
    return %arg0, %c0_i32 : i32, i32
  }
  func.func @transform_1(%arg0: i32, %arg1: i32) -> (i32, i32) {
    %c0_i32 = arith.constant 0 : i32
    %c0_i32_0 = arith.constant 0 : i32
    return %c0_i32, %arg1 : i32, i32
  }
  func.func @transform_2(%arg0: i32, %arg1: i32) -> (i32, i32) {
    %c0_i32 = arith.constant 0 : i32
    return %arg0, %arg1 : i32, i32
  }
  func.func @transform_3(%arg0: i32, %arg1: i32) -> (i32, i32) {
    %c0_i32 = arith.constant 0 : i32
    %c0_i32_0 = arith.constant 0 : i32
    return %arg0, %c0_i32 : i32, i32
  }
  func.func @transform_4(%arg0: i32, %arg1: i32) -> (i32, i32) {
    %c0_i32 = arith.constant 0 : i32
    %c0_i32_0 = arith.constant 0 : i32
    return %arg0, %c0_i32 : i32, i32
  }
}

</mosaic_0001>

<bundles_post_ra>
// kernel: tpu_custom_call.1
= control target key start
LH: loop header
LB: loop body
LE: loop exit
PB: predicated region body
PF: predicated region fallthrough
CT: control target
= control target key end

     0   :  { %s2749_s0 = inlined_call_operand.hbm [shape: f32[4,64], index: 0, kind: input, shape index: {}]   ;;  %s2750_s1 = inlined_call_operand.hbm [shape: f32[64,2304], index: 1, kind: input, shape index: {}]   ;;  %s2751_s2 = inlined_call_operand.hbm [shape: f32[4,2304], index: 2, kind: output, shape index: {0}]   ;;  %s2752_s3 = inlined_call_operand.vmem [shape: f32[4,1], index: 3, kind: output, shape index: {1}]   ;;  %s2753_s4 = inlined_call_operand.vmem [shape: s32[4,1], index: 4, kind: output, shape index: {2}]  }
   0x1   :  { %2759 = sst [smem:[#allocation14_spill]] %s2749_s0 }
   0x2   :  { %10 = vsyncpa [#allocation6], 0 }
   0x3   :  { %11 = vsyncpa [#allocation9], 0 }
   0x4   :  { %13 = vsyncpa [#allocation9 + $0x1], 0 }
   0x5   :  { %14 = vsyncpa [#allocation7], 0 }
   0x6   :  { %16 = vsyncpa [#allocation7 + $0x1], 0  ;;  %s1975_s15 = smov 0   ;;  %s1977_s16 = smov 0  }
   0x7   :  { %s1979_s17 = smov 0   ;;  %s1981_s18 = smov 0  }
   0x8   :  { %s1983_s19 = smov 0   ;;  %s1985_s20 = smov 0  }
   0x9 LB: > { %s1515_s21 = sadd.s32 4294967295, %s1938_s20   ;;  %s1516_s22 = sadd.s32 4294967294, %s1938_s20   ;;  %s1938_s20 = sphi %s1985_s20, %s22_s20   ;;  %s1934_s19 = sphi %s1983_s19, %s2782_s19   ;;  %s1930_s18 = sphi %s1981_s18, %s2781_s18   ;;  %s1926_s17 = sphi %s1979_s17, %s2780_s17   ;;  %s1922_s16 = sphi %s1977_s16, %s2779_s16   ;;  %s1918_s15 = sphi %s1975_s15, %s2778_s15  }
   0xa   : > { %s31_s23 = sadd.s32 1, %s1934_s19  ;;  %s67_s24 = sadd.s32 1, %s1926_s17 }
   0xb   : > { %p32_p0 = scmp.ge.s32.totalorder %s31_s23, 2  ;;  %p74_p1 = scmp.ne.s32.totalorder %s1926_s17, %s1922_s16 }
   0xc   : > { %p75_p2 = scmp.eq.s32.totalorder %s1938_s20, 0  ;;  %p80_p3 = scmp.ne.s32.totalorder %s1922_s16, %s1918_s15 }
   0xd   : > { %s2784_s23 = smov (%p32_p0, %s31_s23), 0  ;;  %p2020_p5 = scmp.eq.s32.totalorder %s1515_s21, 0 }
   0xe   : > { %p2016_p4 = por %p75_p2, %p74_p1  ;;  %s64_s27 = ssub.s32 %s1934_s19, %s2784_s23 }
   0xf   : > { %s2761_s26 = scalar_select %p2020_p5, 1, 0 }
  0x10   : > { %s2760_s25 = scalar_select %p2016_p4, 1, 0 }
  0x11   : > { %p106_p6 = scmp.eq.s32.totalorder %s1515_s21, 1  ;;  %p65_p7 = scmp.eq.s32.totalorder %s64_s27, 0 }
  0x12   : > { %p2028_p8 = por %p2020_p5, %p80_p3  ;;  %p112_p10 = scmp.eq.s32.totalorder %s1516_s22, 1 }
  0x13   : > { %p2032_p9 = por %p106_p6, %p74_p1  ;;  %p1517_p12 = scmp.ge.s32.totalorder %s1938_s20, 1 }
  0x14   : > { %s2762_s28 = scalar_select %p2028_p8, 1, 0 }
  0x15   : > { %s2763_s29 = scalar_select %p2032_p9, 1, 0 }
  0x16   : > { %s2037_s30 = scalar_select %p65_p7, %s1926_s17, %s67_s24  }
  0x17   : > { %p2039_p11 = por %p112_p10, %p80_p3  ;;  %p171_p13 = scmp.lt.s32.totalorder %s1938_s20, 3 }
  0x18   : > { %s1940_s7 = smov [#allocation5]   ;;  %s2767_s0 = sld [smem:[#allocation14_spill]] }
  0x19   : > { %s2764_s5 = scalar_select %p2039_p11, 1, 0 }
  0x1a   : > { %p2045_p0 = pnand %p1517_p12, %p171_p13  ;;  %s186_s8 = sshll.u32 %s1940_s7, 4  ;;  %s187_s8 = int_to_ptr.vmem [resolvable:$true] %s186_s8 }
  0x1c   : > { %s2765_s6 = scalar_select %p2045_p0, 1, 0 }
  0x1d   : > { %p1692_p1 = pneg %p2045_p0 }
  0x1e   : > { %s1796_s12 = scalar_lea.hbm %s2767_s0, 64 }
  0x1f   : > { %p2053_p2 = pnand %p1692_p1, %p2020_p5  ;;  %p1797_p3 = scmp.ne.s32.totalorder %s2767_s0, %s1796_s12 }
  0x20   : > { %p1803_p12 = scmp.lt.u32.totalorder %s1796_s12, %s2767_s0 }
  0x21   : > { %p1798_p6 = pneg %p2053_p2 }
  0x23   : > { %p1799_p7 = pnand %p1798_p6, %p1797_p3 }
  0x25   : > { %p1800_p10 = pneg %p1799_p7 }
  0x27   : > { %p1805_p13 = pnand %p1803_p12, %p1800_p10 }
  0x29   : > { %1808 = shalt.err (!%p1805_p13)
}
  0x2a   : > { %s1809_s24 = scalar_lea.vmem %s187_s8, 64  ;;  %p1817_p8 = scmp.lt.s32.totalorder %s187_s8, %s187_s8 }
  0x2b   : > { %p1810_p1 = scmp.ne.s32.totalorder %s187_s8, %s1809_s24  ;;  %p1818_p5 = scmp.lt.s32.totalorder %s1809_s24, %s1809_s24 }
  0x2d   : > { %p1812_p11 = pnand %p1810_p1, %p1798_p6  ;;  %p1819_p0 = por %p1818_p5, %p1817_p8 }
  0x2f   : > { %p1813_p9 = pneg %p1812_p11 }
  0x31   : > { %p1820_p4 = pnand %p1819_p0, %p1813_p9 }
  0x33   : > { %1823 = shalt.err (!%p1820_p4)
}
  0x34   : > { %1695 = dma.hbm_to_vmem [thread:$0]  (!%p2053_p2), %s2767_s0, 64, %s187_s8, [#allocation6]  }
  0x35   : > { %p1519_p3 = scmp.ge.s32.totalorder %s1938_s20, 2 }
  0x36   : > { %p2768_p7 = scmp.ne.s32.totalorder (!%p1519_p3), %s2760_s25, 0 }
  0x37   : > { %193 = sbr.rel (%p1519_p3) target bundleno = 97 (0x61), region = 20 }
  0x3e   : > { %196 = sbr.rel (!%p2768_p7) target bundleno = 97 (0x61), region = 24  ;;  %s197_s10 = sand.u32 (%p2768_p7), 1, %s1926_s17  }
  0x3f   : > { %s1521_s11 = sshll.u32 (%p2768_p7), %s1934_s19, 4  ;;  %s1520_s12 = sshll.u32 (%p2768_p7), %s197_s10, 10 }
  0x40   : > { %s203_s13 = ssub.s32 (%p2768_p7), 18, %s1521_s11  ;;  %s2086_s14 = scalar_lea.sflag (%p2768_p7), [#allocation9], %s197_s10 }
  0x41   : > { %p204_p4 = scmp.lt.s32.totalorder (%p2768_p7), %s203_s13, 16  ;;  %s201_s21 = scalar_lea.vmem (%p2768_p7), [#allocation8], %s1520_s12 }
  0x45   : > { %s2786_s13 = smov (!%p204_p4, %s203_s13), 16 }
  0x46   : > { %s2083_s9 = sshll.u32 %s2786_s13, 10 }
  0x47   : > { %s208_s8 = ssub.s32 16384, %s2083_s9 }
  0x48   : > { %209 = vsyncadd %s2086_s14, %s208_s8  ;;  %p1523_p5 = scmp.ne.s32.totalorder %s2083_s9, 0  ;;  %s1554_s25 = sshll.u32 %s1934_s19, 11 }
  0x49   : > { %s2094_s27 = scalar_lea.hbm %s2750_s1, %s1554_s25  ;;  %s1525_s7 = sshll.u32 %s2786_s13, 3 }
  0x4a   : > { %s215_s10 = sshll.u32 %s201_s21, 4  ;;  %s1824_s11 = scalar_lea.hbm %s2094_s27, %s2083_s9  ;;  %s2097_s10 = int_to_ptr.vmem [resolvable:$true] %s215_s10 }
  0x4b   : > { %p1825_p8 = scmp.ne.s32.totalorder %s2094_s27, %s1824_s11  ;;  %s1828_s0 = scalar_lea.hbm %s2750_s1, 18432 }
  0x4c   : > { %p1829_p0 = scmp.lt.u32.totalorder %s2094_s27, %s2750_s1  ;;  %p1830_p2 = scmp.lt.u32.totalorder %s1828_s0, %s1824_s11 }
  0x4d   : > { %p1826_p9 = pnand %p1825_p8, %p1523_p5  ;;  %p1832_p10 = scmp.lt.u32.totalorder %s1824_s11, %s2094_s27 }
  0x4e   : > { %p1831_p6 = por %p1830_p2, %p1829_p0 }
  0x4f   : > { %p1827_p11 = pneg %p1826_p9 }
  0x50   : > { %p1833_p12 = por %p1832_p10, %p1831_p6 }
  0x52   : > { %p1834_p13 = pnand %p1833_p12, %p1827_p11 }
  0x54   : > { %1837 = shalt.err (!%p1834_p13)
}
  0x55   : > { %s1838_s21 = scalar_lea.vmem %s2097_s10, %s2083_s9  ;;  %s1941_s24 = smov [#allocation8]  }
  0x56   : > { %p1839_p1 = scmp.ne.s32.totalorder %s2097_s10, %s1838_s21  ;;  %s1842_s12 = sshll.u32 %s1941_s24, 4  ;;  %s1843_s12 = int_to_ptr.vmem [resolvable:$false] %s1842_s12 }
  0x57   : > { %s1844_s8 = scalar_lea.vmem %s1843_s12, 32768  ;;  %p1845_p8 = scmp.lt.s32.totalorder %s2097_s10, %s1843_s12 }
  0x58   : > { %p1840_p7 = pnand %p1839_p1, %p1523_p5  ;;  %p1846_p9 = scmp.lt.s32.totalorder %s1844_s8, %s1838_s21 }
  0x5a   : > { %p1841_p4 = pneg %p1840_p7  ;;  %p1847_p0 = por %p1846_p9, %p1845_p8 }
  0x5c   : > { %p1848_p2 = pnand %p1847_p0, %p1841_p4 }
  0x5e   : > { %1851 = shalt.err (!%p1848_p2)
}
  0x5f   : > { %s1942_s0 = smov 2304   ;;  %s1943_s11 = smov 2048  }
  0x60   : > { %221 = dma.hbm_to_vmem [thread:$0]  (%p1523_p5), %s2094_s27, %s2083_s9, %s2097_s10, %s2086_s14, %s1942_s0, %s1943_s11, %s1525_s7  }
  0x61 PF: > { %p2769_p11 = scmp.ne.s32.totalorder %s2765_s6, 0 }
  0x62   : > { %p2770_p6 = scmp.ne.s32.totalorder (!%p2769_p11), %s2761_s26, 0 }
  0x63   : > { %227 = sbr.rel (%p2769_p11) target bundleno = 929 (0x3a1), region = 28 }
  0x6a   : > { %1905 = dma.done.wait (%p2770_p6), [#allocation6], 64  }
  0x6b   : > { %1907 = vsyncadd (%p2770_p6), [#allocation6], 4294967232  ;;  %s2133_s22 = sand.u32 1, %s1922_s16   ;;  %p2771_p5 = scmp.ne.s32.totalorder %s2762_s28, 0 }
  0x6c   : > { %s1530_s25 = sshll.u32 %s2133_s22, 10  ;;  %s234_s13 = scalar_lea.sflag [#allocation9], %s2133_s22 }
  0x6d   : > { %s2137_s9 = scalar_lea.vmem [#allocation8], %s1530_s25 }
  0x6e   : > { %1909 = dma.done.wait (%p2771_p5), %s234_s13, 16384  }
  0x6f   : > { %1911 = vsyncadd (%p2771_p5), %s234_s13, 4294950912  ;;  %s1531_s6 = sshll.u32 %s2133_s22, 6  ;;  %p1532_p10 = scmp.ne.s32.totalorder %s1930_s18, 0 }
  0x70   : > { %s2144_s14 = scalar_lea.vmem [#allocation10], %s1531_s6  ;;  %vm292_vm0 = vcmask (!%p1532_p10), 3072   ;;  %v1944_v0 = vmov (!%p1532_p10), -1e+30   ;;  %v1945_v1 = vmov (!%p1532_p10), 0.0   ;;  %v1946_v2 = vmov (!%p1532_p10), 0  }
  0x71   : > { %291 = sbr.rel (%p1532_p10) target bundleno = 120 (0x78), region = 40  ;;  %293 = vst.msk [vmem:[#allocation2] sm:$0xf] (!%p1532_p10), %vm292_vm0, %v1944_v0  ;;  %294 = vst.msk [vmem:[#allocation3] sm:$0xf] (!%p1532_p10), %vm292_vm0, %v1945_v1 }
  0x72   : > { %295 = vst.msk [vmem:[#allocation4] sm:$0xf] (!%p1532_p10), %vm292_vm0, %v1946_v2 }
  0x78 PF: > { %v298_v3 = vld [vmem:[%s2137_s9 + $0x8] sm:$0xff]  ;;  %v300_v5 = vld [vmem:[%s2137_s9 + $0x18] sm:$0xff]  ;;  %v297_v8 = vld [vmem:[%s2137_s9] sm:$0xff]  ;;  %v1947_v10 = vmov 0.0   ;;  %vm425_vm1 = vcmask 523264   ;;  %s1541_s26 = sshll.u32 %s1930_s18, 11 }
  0x79   : > { %v314_v4 = vld [vmem:[%s2137_s9 + $0x88] sm:$0xff]  ;;  %v316_v7 = vld [vmem:[%s2137_s9 + $0x98] sm:$0xff]  ;;  %v313_v9 = vld [vmem:[%s2137_s9 + $0x80] sm:$0xff]  ;;  %493 = vmatprep.mubr.f32.mxu0 %v1947_v10  ;;  %564 = vmatprep.mubr.f32.mxu1 %v1947_v10  ;;  %vm1064_vm2 = vcmask 1043456   ;;  %p1542_p12 = scmp.ne.s32.totalorder %s1930_s18, 1 }
  0x7a   : > { %v1558_v6 = vpack.c.bf16 %v314_v4, %v298_v3  ;;  %v1574_v11 = vpack.c.bf16 %v316_v7, %v300_v5  ;;  %v1560_v12 = vpack.c.bf16 %v313_v9, %v297_v8  ;;  %v299_v13 = vld [vmem:[%s2137_s9 + $0x10] sm:$0xff]  ;;  %v330_v15 = vld [vmem:[%s2137_s9 + $0x108] sm:$0xff]  ;;  %v332_v18 = vld [vmem:[%s2137_s9 + $0x118] sm:$0xff] }
  0x7b   : > { %v315_v14 = vld [vmem:[%s2137_s9 + $0x90] sm:$0xff]  ;;  %v346_v17 = vld [vmem:[%s2137_s9 + $0x188] sm:$0xff]  ;;  %v348_v19 = vld [vmem:[%s2137_s9 + $0x198] sm:$0xff] }
  0x7c   : > { %1559 = vmatprep.subr.bf16.mxu0 %v1558_v6  ;;  %v1576_v16 = vpack.c.bf16 %v315_v14, %v299_v13  ;;  %1575 = vmatprep.subr.bf16.mxu1 %v1574_v11  ;;  %v1562_v20 = vpack.c.bf16 %v346_v17, %v330_v15  ;;  %v1578_v21 = vpack.c.bf16 %v348_v19, %v332_v18  ;;  %v329_v22 = vld [vmem:[%s2137_s9 + $0x100] sm:$0xff]  ;;  %v331_v24 = vld [vmem:[%s2137_s9 + $0x110] sm:$0xff]  ;;  %v362_v27 = vld [vmem:[%s2137_s9 + $0x208] sm:$0xff] }
  0x7d   : > { %1561 = vmatpush1.bf16.msra.mxu0 %v1560_v12  ;;  %v345_v23 = vld [vmem:[%s2137_s9 + $0x180] sm:$0xff]  ;;  %v347_v26 = vld [vmem:[%s2137_s9 + $0x190] sm:$0xff]  ;;  %v378_v28 = vld [vmem:[%s2137_s9 + $0x288] sm:$0xff] }
  0x7e   : > { %1577 = vmatpush1.bf16.msra.mxu1 %v1576_v16  ;;  %v1564_v25 = vpack.c.bf16 %v345_v23, %v329_v22  ;;  %1563 = vmatprep.subr.bf16.mxu0 %v1562_v20  ;;  %v1580_v29 = vpack.c.bf16 %v347_v26, %v331_v24  ;;  %v1566_v30 = vpack.c.bf16 %v378_v28, %v362_v27  ;;  %v364_v31 = vld [vmem:[%s2137_s9 + $0x218] sm:$0xff]  ;;  %v361_v33 = vld [vmem:[%s2137_s9 + $0x200] sm:$0xff]  ;;  %v363_v36 = vld [vmem:[%s2137_s9 + $0x210] sm:$0xff] }
  0x7f   : > { %1579 = vmatprep.subr.bf16.mxu1 %v1578_v21  ;;  %v380_v32 = vld [vmem:[%s2137_s9 + $0x298] sm:$0xff]  ;;  %v377_v35 = vld [vmem:[%s2137_s9 + $0x280] sm:$0xff]  ;;  %v379_v37 = vld [vmem:[%s2137_s9 + $0x290] sm:$0xff] }
  0x80   : > { %v1582_v34 = vpack.c.bf16 %v380_v32, %v364_v31  ;;  %v1568_v38 = vpack.c.bf16 %v377_v35, %v361_v33  ;;  %v394_v39 = vld [vmem:[%s2137_s9 + $0x308] sm:$0xff]  ;;  %v396_v41 = vld [vmem:[%s2137_s9 + $0x318] sm:$0xff]  ;;  %v1584_v42 = vpack.c.bf16 %v379_v37, %v363_v36  ;;  %v393_v45 = vld [vmem:[%s2137_s9 + $0x300] sm:$0xff] }
  0x81   : > { %1565 = vmatpush1.bf16.msra.mxu0 %v1564_v25  ;;  %v410_v40 = vld [vmem:[%s2137_s9 + $0x388] sm:$0xff]  ;;  %v412_v44 = vld [vmem:[%s2137_s9 + $0x398] sm:$0xff]  ;;  %v409_v46 = vld [vmem:[%s2137_s9 + $0x380] sm:$0xff] }
  0x82   : > { %1581 = vmatpush1.bf16.msra.mxu1 %v1580_v29  ;;  %1567 = vmatprep.subr.bf16.mxu0 %v1566_v30  ;;  %v1570_v43 = vpack.c.bf16 %v410_v40, %v394_v39  ;;  %v1586_v47 = vpack.c.bf16 %v412_v44, %v396_v41  ;;  %v395_v48 = vld [vmem:[%s2137_s9 + $0x310] sm:$0xff]  ;;  %v302_v50 = vld [vmem:[%s2137_s9 + $0x28] sm:$0xff]  ;;  %v304_v52 = vld [vmem:[%s2137_s9 + $0x38] sm:$0xff]  ;;  %v1572_v53 = vpack.c.bf16 %v409_v46, %v393_v45 }
  0x83   : > { %1583 = vmatprep.subr.bf16.mxu1 %v1582_v34  ;;  %v411_v49 = vld [vmem:[%s2137_s9 + $0x390] sm:$0xff]  ;;  %v318_v51 = vld [vmem:[%s2137_s9 + $0xa8] sm:$0xff]  ;;  %v320_v54 = vld [vmem:[%s2137_s9 + $0xb8] sm:$0xff] }
  0x84   : > { %v1588_v55 = vpack.c.bf16 %v411_v49, %v395_v48  ;;  %v1590_v56 = vpack.c.bf16 %v318_v51, %v302_v50  ;;  %v301_v57 = vld [vmem:[%s2137_s9 + $0x20] sm:$0xff]  ;;  %v303_v59 = vld [vmem:[%s2137_s9 + $0x30] sm:$0xff]  ;;  %v1606_v60 = vpack.c.bf16 %v320_v54, %v304_v52  ;;  %v334_v62 = vld [vmem:[%s2137_s9 + $0x128] sm:$0xff] }
  0x85   : > { %1569 = vmatpush1.bf16.msra.mxu0 %v1568_v38  ;;  %v317_v58 = vld [vmem:[%s2137_s9 + $0xa0] sm:$0xff]  ;;  %v319_v61 = vld [vmem:[%s2137_s9 + $0xb0] sm:$0xff]  ;;  %v350_v63 = vld [vmem:[%s2137_s9 + $0x1a8] sm:$0xff] }
  0x86   : > { %1585 = vmatpush1.bf16.msra.mxu1 %v1584_v42  ;;  %1571 = vmatprep.subr.bf16.mxu0 %v1570_v43  ;;  %v336_v0 = vld [vmem:[%s2137_s9 + $0x138] sm:$0xff]  ;;  %v1592_v3 = vpack.c.bf16 %v317_v58, %v301_v57  ;;  %v1608_v4 = vpack.c.bf16 %v319_v61, %v303_v59  ;;  %v1594_v5 = vpack.c.bf16 %v350_v63, %v334_v62  ;;  %v333_v6 = vld [vmem:[%s2137_s9 + $0x120] sm:$0xff]  ;;  %v335_v8 = vld [vmem:[%s2137_s9 + $0x130] sm:$0xff] }
  0x87   : > { %1587 = vmatprep.subr.bf16.mxu1 %v1586_v47  ;;  %v352_v1 = vld [vmem:[%s2137_s9 + $0x1b8] sm:$0xff]  ;;  %v349_v7 = vld [vmem:[%s2137_s9 + $0x1a0] sm:$0xff]  ;;  %v351_v11 = vld [vmem:[%s2137_s9 + $0x1b0] sm:$0xff] }
  0x88   : > { %v2193_v2 = vld [vmem:[#allocation5] sm:$0xf]  ;;  %v1610_v9 = vpack.c.bf16 %v352_v1, %v336_v0  ;;  %v366_v12 = vld [vmem:[%s2137_s9 + $0x228] sm:$0xff]  ;;  %v1596_v16 = vpack.c.bf16 %v349_v7, %v333_v6  ;;  %v1612_v17 = vpack.c.bf16 %v351_v11, %v335_v8  ;;  %v365_v19 = vld [vmem:[%s2137_s9 + $0x220] sm:$0xff] }
  0x89   : > { %1573 = vmatpush1.bf16.msra.mxu0 %v1572_v53  ;;  %v382_v13 = vld [vmem:[%s2137_s9 + $0x2a8] sm:$0xff]  ;;  %v368_v14 = vld [vmem:[%s2137_s9 + $0x238] sm:$0xff]  ;;  %v381_v20 = vld [vmem:[%s2137_s9 + $0x2a0] sm:$0xff] }
  0x8a   : > { %1589 = vmatpush1.bf16.msra.mxu1 %v1588_v55  ;;  %1591 = vmatprep.subr.bf16.mxu0 %v1590_v56  ;;  %v384_v15 = vld [vmem:[%s2137_s9 + $0x2b8] sm:$0xff]  ;;  %v1598_v18 = vpack.c.bf16 %v382_v13, %v366_v12  ;;  %v367_v21 = vld [vmem:[%s2137_s9 + $0x230] sm:$0xff]  ;;  %v398_v24 = vld [vmem:[%s2137_s9 + $0x328] sm:$0xff]  ;;  %v1600_v28 = vpack.c.bf16 %v381_v20, %v365_v19 }
  0x8b   : > { %1607 = vmatprep.subr.bf16.mxu1 %v1606_v60  ;;  %v1614_v22 = vpack.c.bf16 %v384_v15, %v368_v14  ;;  %v383_v23 = vld [vmem:[%s2137_s9 + $0x2b0] sm:$0xff]  ;;  %v414_v25 = vld [vmem:[%s2137_s9 + $0x3a8] sm:$0xff]  ;;  %v400_v26 = vld [vmem:[%s2137_s9 + $0x338] sm:$0xff] }
  0x8c   : > { %1533 = vmatmul.mubr.msk.f32.vlgmr.msra.gmra.mrb[0].mxu0 %vm425_vm1, %v2193_v2  ;;  %v416_v27 = vld [vmem:[%s2137_s9 + $0x3b8] sm:$0xff]  ;;  %v1616_v29 = vpack.c.bf16 %v383_v23, %v367_v21  ;;  %v1602_v30 = vpack.c.bf16 %v414_v25, %v398_v24  ;;  %v397_v31 = vld [vmem:[%s2137_s9 + $0x320] sm:$0xff]  ;;  %v399_v33 = vld [vmem:[%s2137_s9 + $0x330] sm:$0xff] }
  0x8d   : > { %1534 = vmatmul.mubr.msk.f32.vlgmr.msra.gmra.mrb[0].mxu1 %vm425_vm1, %v2193_v2  ;;  %1593 = vmatpush1.bf16.msra.mxu0 %v1592_v3  ;;  %v413_v32 = vld [vmem:[%s2137_s9 + $0x3a0] sm:$0xff]  ;;  %v1618_v34 = vpack.c.bf16 %v416_v27, %v400_v26  ;;  %v415_v35 = vld [vmem:[%s2137_s9 + $0x3b0] sm:$0xff]  ;;  %v306_v36 = vld [vmem:[%s2137_s9 + $0x48] sm:$0xff] }
  0x8e   : > { %1609 = vmatpush1.bf16.msra.mxu1 %v1608_v4  ;;  %1595 = vmatprep.subr.bf16.mxu0 %v1594_v5  ;;  %v322_v37 = vld [vmem:[%s2137_s9 + $0xc8] sm:$0xff]  ;;  %v308_v38 = vld [vmem:[%s2137_s9 + $0x58] sm:$0xff]  ;;  %v1604_v40 = vpack.c.bf16 %v413_v32, %v397_v31  ;;  %v1620_v41 = vpack.c.bf16 %v415_v35, %v399_v33  ;;  %v305_v43 = vld [vmem:[%s2137_s9 + $0x40] sm:$0xff] }
  0x8f   : > { %1611 = vmatprep.subr.bf16.mxu1 %v1610_v9  ;;  %635 = vmatprep.mubr.f32.mxu0 %v1947_v10  ;;  %v324_v39 = vld [vmem:[%s2137_s9 + $0xd8] sm:$0xff]  ;;  %v1622_v42 = vpack.c.bf16 %v322_v37, %v306_v36  ;;  %v321_v44 = vld [vmem:[%s2137_s9 + $0xc0] sm:$0xff]  ;;  %v307_v45 = vld [vmem:[%s2137_s9 + $0x50] sm:$0xff] }
  0x90   : > { %706 = vmatprep.mubr.f32.mxu1 %v1947_v10  ;;  %v1638_v46 = vpack.c.bf16 %v324_v39, %v308_v38  ;;  %v323_v47 = vld [vmem:[%s2137_s9 + $0xd0] sm:$0xff]  ;;  %v338_v48 = vld [vmem:[%s2137_s9 + $0x148] sm:$0xff]  ;;  %v340_v50 = vld [vmem:[%s2137_s9 + $0x158] sm:$0xff]  ;;  %v1624_v52 = vpack.c.bf16 %v321_v44, %v305_v43 }
  0x91   : > { %1597 = vmatpush1.bf16.msra.mxu0 %v1596_v16  ;;  %v354_v49 = vld [vmem:[%s2137_s9 + $0x1c8] sm:$0xff]  ;;  %v356_v51 = vld [vmem:[%s2137_s9 + $0x1d8] sm:$0xff]  ;;  %v1640_v53 = vpack.c.bf16 %v323_v47, %v307_v45  ;;  %v337_v55 = vld [vmem:[%s2137_s9 + $0x140] sm:$0xff] }
  0x92   : > { %1613 = vmatpush1.bf16.msra.mxu1 %v1612_v17  ;;  %1599 = vmatprep.subr.bf16.mxu0 %v1598_v18  ;;  %v1626_v54 = vpack.c.bf16 %v354_v49, %v338_v48  ;;  %v353_v56 = vld [vmem:[%s2137_s9 + $0x1c0] sm:$0xff]  ;;  %v339_v57 = vld [vmem:[%s2137_s9 + $0x150] sm:$0xff]  ;;  %v1642_v58 = vpack.c.bf16 %v356_v51, %v340_v50  ;;  %v370_v60 = vld [vmem:[%s2137_s9 + $0x248] sm:$0xff] }
  0x93   : > { %1615 = vmatprep.subr.bf16.mxu1 %v1614_v22  ;;  %v355_v59 = vld [vmem:[%s2137_s9 + $0x1d0] sm:$0xff]  ;;  %v386_v61 = vld [vmem:[%s2137_s9 + $0x2c8] sm:$0xff]  ;;  %v372_v62 = vld [vmem:[%s2137_s9 + $0x258] sm:$0xff]  ;;  %v1628_v0 = vpack.c.bf16 %v353_v56, %v337_v55 }
  0x94   : > { %v388_v63 = vld [vmem:[%s2137_s9 + $0x2d8] sm:$0xff]  ;;  %v1644_v1 = vpack.c.bf16 %v355_v59, %v339_v57  ;;  %v1630_v3 = vpack.c.bf16 %v386_v61, %v370_v60  ;;  %v369_v4 = vld [vmem:[%s2137_s9 + $0x240] sm:$0xff]  ;;  %v371_v6 = vld [vmem:[%s2137_s9 + $0x250] sm:$0xff] }
  0x95   : > { %1601 = vmatpush1.bf16.msra.mxu0 %v1600_v28  ;;  %v385_v5 = vld [vmem:[%s2137_s9 + $0x2c0] sm:$0xff]  ;;  %v1646_v7 = vpack.c.bf16 %v388_v63, %v372_v62  ;;  %v387_v8 = vld [vmem:[%s2137_s9 + $0x2d0] sm:$0xff]  ;;  %v402_v9 = vld [vmem:[%s2137_s9 + $0x348] sm:$0xff] }
  0x96   : > { %1617 = vmatpush1.bf16.msra.mxu1 %v1616_v29  ;;  %1603 = vmatprep.subr.bf16.mxu0 %v1602_v30  ;;  %v418_v11 = vld [vmem:[%s2137_s9 + $0x3c8] sm:$0xff]  ;;  %v404_v12 = vld [vmem:[%s2137_s9 + $0x358] sm:$0xff]  ;;  %v1632_v14 = vpack.c.bf16 %v385_v5, %v369_v4  ;;  %v1648_v15 = vpack.c.bf16 %v387_v8, %v371_v6  ;;  %v401_v17 = vld [vmem:[%s2137_s9 + $0x340] sm:$0xff] }
  0x97   : > { %1619 = vmatprep.subr.bf16.mxu1 %v1618_v34  ;;  %v420_v13 = vld [vmem:[%s2137_s9 + $0x3d8] sm:$0xff]  ;;  %v1634_v16 = vpack.c.bf16 %v418_v11, %v402_v9  ;;  %v417_v18 = vld [vmem:[%s2137_s9 + $0x3c0] sm:$0xff]  ;;  %v403_v19 = vld [vmem:[%s2137_s9 + $0x350] sm:$0xff] }
  0x98   : > { %v1650_v20 = vpack.c.bf16 %v420_v13, %v404_v12  ;;  %v419_v21 = vld [vmem:[%s2137_s9 + $0x3d0] sm:$0xff]  ;;  %v310_v22 = vld [vmem:[%s2137_s9 + $0x68] sm:$0xff]  ;;  %v312_v24 = vld [vmem:[%s2137_s9 + $0x78] sm:$0xff]  ;;  %v1636_v26 = vpack.c.bf16 %v417_v18, %v401_v17 }
  0x99   : > { %1605 = vmatpush1.bf16.msra.mxu0 %v1604_v40  ;;  %v326_v23 = vld [vmem:[%s2137_s9 + $0xe8] sm:$0xff]  ;;  %v328_v25 = vld [vmem:[%s2137_s9 + $0xf8] sm:$0xff]  ;;  %v1652_v27 = vpack.c.bf16 %v419_v21, %v403_v19  ;;  %v309_v29 = vld [vmem:[%s2137_s9 + $0x60] sm:$0xff]  ;;  %v998_v19 = vlaneseq }
  0x9a   : > { %1621 = vmatpush1.bf16.msra.mxu1 %v1620_v41  ;;  %1623 = vmatprep.subr.bf16.mxu0 %v1622_v42  ;;  %v1654_v28 = vpack.c.bf16 %v326_v23, %v310_v22  ;;  %v325_v30 = vld [vmem:[%s2137_s9 + $0xe0] sm:$0xff]  ;;  %v311_v31 = vld [vmem:[%s2137_s9 + $0x70] sm:$0xff]  ;;  %v1670_v32 = vpack.c.bf16 %v328_v25, %v312_v24  ;;  %v342_v34 = vld [vmem:[%s2137_s9 + $0x168] sm:$0xff]  ;;  %v2327_v23 = vstv %s1541_s26 }
  0x9b   : > { %1639 = vmatprep.subr.bf16.mxu1 %v1638_v46  ;;  %v327_v33 = vld [vmem:[%s2137_s9 + $0xf0] sm:$0xff]  ;;  %v358_v35 = vld [vmem:[%s2137_s9 + $0x1e8] sm:$0xff]  ;;  %v344_v36 = vld [vmem:[%s2137_s9 + $0x178] sm:$0xff]  ;;  %v1656_v38 = vpack.c.bf16 %v325_v30, %v309_v29  ;;  %v999_v21 = vand.u32 127, %v998_v19 }
  0x9c   : > { %1535 = vmatmul.mubr.msk.f32.vlgmr.msra.gmra.mrb[2].mxu0 %vm425_vm1, %v2193_v2  ;;  %v360_v37 = vld [vmem:[%s2137_s9 + $0x1f8] sm:$0xff]  ;;  %v1672_v39 = vpack.c.bf16 %v327_v33, %v311_v31  ;;  %v1658_v40 = vpack.c.bf16 %v358_v35, %v342_v34  ;;  %v341_v41 = vld [vmem:[%s2137_s9 + $0x160] sm:$0xff]  ;;  %v343_v43 = vld [vmem:[%s2137_s9 + $0x170] sm:$0xff] }
  0x9d   : > { %1536 = vmatmul.mubr.msk.f32.vlgmr.msra.gmra.mrb[2].mxu1 %vm425_vm1, %v2193_v2  ;;  %1625 = vmatpush1.bf16.msra.mxu0 %v1624_v52  ;;  %v357_v42 = vld [vmem:[%s2137_s9 + $0x1e0] sm:$0xff]  ;;  %v1674_v44 = vpack.c.bf16 %v360_v37, %v344_v36  ;;  %v359_v45 = vld [vmem:[%s2137_s9 + $0x1f0] sm:$0xff]  ;;  %v374_v46 = vld [vmem:[%s2137_s9 + $0x268] sm:$0xff]  ;;  %v1001_v22 = vadd.s32 256, %v999_v21  ;;  %v1000_v24 = vadd.s32 128, %v999_v21  ;;  %v1002_v25 = vadd.s32 384, %v999_v21 }
  0x9e   : > { %1641 = vmatpush1.bf16.msra.mxu1 %v1640_v53  ;;  %1627 = vmatprep.subr.bf16.mxu0 %v1626_v54  ;;  %v390_v47 = vld [vmem:[%s2137_s9 + $0x2e8] sm:$0xff]  ;;  %v376_v48 = vld [vmem:[%s2137_s9 + $0x278] sm:$0xff]  ;;  %v1660_v50 = vpack.c.bf16 %v357_v42, %v341_v41  ;;  %v1676_v51 = vpack.c.bf16 %v359_v45, %v343_v43  ;;  %v373_v53 = vld [vmem:[%s2137_s9 + $0x260] sm:$0xff]  ;;  %v1006_v29 = vadd.s32 896, %v999_v21  ;;  %v1007_v30 = vadd.s32 1024, %v999_v21 }
  0x9f   : > { %1643 = vmatprep.subr.bf16.mxu1 %v1642_v58  ;;  %777 = vmatprep.mubr.f32.mxu0 %v1947_v10  ;;  %v392_v49 = vld [vmem:[%s2137_s9 + $0x2f8] sm:$0xff]  ;;  %v1662_v52 = vpack.c.bf16 %v390_v47, %v374_v46  ;;  %v389_v54 = vld [vmem:[%s2137_s9 + $0x2e0] sm:$0xff]  ;;  %v375_v55 = vld [vmem:[%s2137_s9 + $0x270] sm:$0xff]  ;;  %v1009_v31 = vadd.s32 1280, %v999_v21  ;;  %v2330_v33 = vadd.s32 %v2327_v23, %v999_v21  ;;  %v2333_v34 = vadd.s32 %v2327_v23, %v1001_v22 }
  0xa0   : > { %848 = vmatprep.mubr.f32.mxu1 %v1947_v10  ;;  %v1678_v56 = vpack.c.bf16 %v392_v49, %v376_v48  ;;  %v391_v57 = vld [vmem:[%s2137_s9 + $0x2f0] sm:$0xff]  ;;  %v406_v58 = vld [vmem:[%s2137_s9 + $0x368] sm:$0xff]  ;;  %v408_v60 = vld [vmem:[%s2137_s9 + $0x378] sm:$0xff]  ;;  %v1664_v62 = vpack.c.bf16 %v389_v54, %v373_v53  ;;  %v1010_v35 = vadd.s32 1408, %v999_v21  ;;  %v1011_v36 = vadd.s32 1536, %v999_v21 }
  0xa1   : > { %1629 = vmatpush1.bf16.msra.mxu0 %v1628_v0  ;;  %v422_v59 = vld [vmem:[%s2137_s9 + $0x3e8] sm:$0xff]  ;;  %v424_v61 = vld [vmem:[%s2137_s9 + $0x3f8] sm:$0xff]  ;;  %v1680_v63 = vpack.c.bf16 %v391_v57, %v375_v55  ;;  %v407_v5 = vld [vmem:[%s2137_s9 + $0x370] sm:$0xff]  ;;  %v2336_v37 = vadd.s32 %v2327_v23, %v1000_v24  ;;  %v2351_v43 = vadd.s32 %v2327_v23, %v1006_v29  ;;  %v2357_v47 = vadd.s32 %v2327_v23, %v1009_v31 }
  0xa2   : > { %1645 = vmatpush1.bf16.msra.mxu1 %v1644_v1  ;;  %1631 = vmatprep.subr.bf16.mxu0 %v1630_v3  ;;  %v1666_v0 = vpack.c.bf16 %v422_v59, %v406_v58  ;;  %v405_v1 = vld [vmem:[%s2137_s9 + $0x360] sm:$0xff]  ;;  %v1682_v4 = vpack.c.bf16 %v424_v61, %v408_v60  ;;  %v423_v6 = vld [vmem:[%s2137_s9 + $0x3f0] sm:$0xff]  ;;  %vm1032_vm3 = vcmp.lt.s32.totalorder %v2330_v33, 2304  ;;  %vm1034_vm4 = vcmp.lt.s32.totalorder %v2333_v34, 2304 }
  0xa3   : > { %1647 = vmatprep.subr.bf16.mxu1 %v1646_v7  ;;  %v421_v3 = vld [vmem:[%s2137_s9 + $0x3e0] sm:$0xff]  ;;  %v1684_v8 = vpack.c.bf16 %v423_v6, %v407_v5  ;;  %v2368_v53 = vadd.s32 %v2327_v23, %v1011_v36  ;;  %vm1033_vm5 = vcmp.lt.s32.totalorder %v2336_v37, 2304  ;;  %vm1039_vm10 = vcmp.lt.s32.totalorder %v2351_v43, 2304 }
  0xa4   : > { %v1668_v7 = vpack.c.bf16 %v421_v3, %v405_v1  ;;  %v1012_v55 = vadd.s32 1664, %v999_v21  ;;  %vm1042_vm12 = vcmp.lt.s32.totalorder %v2357_v47, 2304  ;;  %v1014_v58 = vadd.s32 1920, %v999_v21 }
  0xa5   : > { %1633 = vmatpush1.bf16.msra.mxu0 %v1632_v14  ;;  %vm1044_vm15 = vcmp.lt.s32.totalorder %v2368_v53, 2304 }
  0xa6   : > { %1649 = vmatpush1.bf16.msra.mxu1 %v1648_v15  ;;  %1635 = vmatprep.subr.bf16.mxu0 %v1634_v16  ;;  %v2419_v1 = vadd.s32 %v2327_v23, %v1012_v55 }
  0xa7   : > { %1651 = vmatprep.subr.bf16.mxu1 %v1650_v20 }
  0xa9   : > { %1637 = vmatpush1.bf16.msra.mxu0 %v1636_v26  ;;  %v1003_v26 = vadd.s32 512, %v999_v21 }
  0xaa   : > { %1653 = vmatpush1.bf16.msra.mxu1 %v1652_v27  ;;  %1655 = vmatprep.subr.bf16.mxu0 %v1654_v28  ;;  %v1005_v27 = vadd.s32 768, %v999_v21  ;;  %v1004_v28 = vadd.s32 640, %v999_v21 }
  0xab   : > { %1671 = vmatprep.subr.bf16.mxu1 %v1670_v32  ;;  %v1008_v32 = vadd.s32 1152, %v999_v21 }
  0xac   : > { %1537 = vmatmul.mubr.msk.f32.vlgmr.msra.gmra.mrb[4].mxu0 %vm425_vm1, %v2193_v2  ;;  %v2345_v41 = vadd.s32 %v2327_v23, %v1005_v27  ;;  %v2348_v42 = vadd.s32 %v2327_v23, %v1004_v28 }
  0xad   : > { %1538 = vmatmul.mubr.msk.f32.vlgmr.msra.gmra.mrb[4].mxu1 %vm425_vm1, %v2193_v2  ;;  %1657 = vmatpush1.bf16.msra.mxu0 %v1656_v38  ;;  %v2339_v38 = vadd.s32 %v2327_v23, %v1002_v25  ;;  %v2360_v48 = vadd.s32 %v2327_v23, %v1008_v32 }
  0xae   : > { %1673 = vmatpush1.bf16.msra.mxu1 %v1672_v39  ;;  %1659 = vmatprep.subr.bf16.mxu0 %v1658_v40  ;;  %v2342_v39 = vadd.s32 %v2327_v23, %v1003_v26  ;;  %vm1038_vm8 = vcmp.lt.s32.totalorder %v2345_v41, 2304  ;;  %vm1037_vm9 = vcmp.lt.s32.totalorder %v2348_v42, 2304 }
  0xaf   : > { %1675 = vmatprep.subr.bf16.mxu1 %v1674_v44  ;;  %919 = vmatprep.mubr.f32.mxu0 %v1947_v10  ;;  %v2354_v44 = vadd.s32 %v2327_v23, %v1007_v30  ;;  %vm1035_vm6 = vcmp.lt.s32.totalorder %v2339_v38, 2304  ;;  %vm1041_vm13 = vcmp.lt.s32.totalorder %v2360_v48, 2304 }
  0xb0   : > { %990 = vmatprep.mubr.f32.mxu1 %v1947_v10  ;;  %vm1036_vm7 = vcmp.lt.s32.totalorder %v2342_v39, 2304 }
  0xb1   : > { %1661 = vmatpush1.bf16.msra.mxu0 %v1660_v50  ;;  %vm1040_vm11 = vcmp.lt.s32.totalorder %v2354_v44, 2304 }
  0xb2   : > { %1677 = vmatpush1.bf16.msra.mxu1 %v1676_v51  ;;  %1663 = vmatprep.subr.bf16.mxu0 %v1662_v52  ;;  %v1013_v51 = vadd.s32 1792, %v999_v21  ;;  %v2365_v52 = vadd.s32 %v2327_v23, %v1010_v35 }
  0xb3   : > { %1679 = vmatprep.subr.bf16.mxu1 %v1678_v56 }
  0xb4   : > { %v2382_v56 = vadd.s32 %v2327_v23, %v1013_v51  ;;  %vm1043_vm14 = vcmp.lt.s32.totalorder %v2365_v52, 2304 }
  0xb5   : > { %1665 = vmatpush1.bf16.msra.mxu0 %v1664_v62 }
  0xb6   : > { %1681 = vmatpush1.bf16.msra.mxu1 %v1680_v63  ;;  %1667 = vmatprep.subr.bf16.mxu0 %v1666_v0  ;;  %vm1046_vm0 = vcmp.lt.s32.totalorder %v2382_v56, 2304 }
  0xb7   : > { %1683 = vmatprep.subr.bf16.mxu1 %v1682_v4 }
  0xb9   : > { %1669 = vmatpush1.bf16.msra.mxu0 %v1668_v7 }
  0xba   : > { %1685 = vmatpush1.bf16.msra.mxu1 %v1684_v8 }
  0xbc   : > { %1539 = vmatmul.mubr.msk.f32.vlgmr.msra.gmra.mrb[6].mxu0 %vm425_vm1, %v2193_v2 }
  0xbd   : > { %1540 = vmatmul.mubr.msk.f32.vlgmr.msra.gmra.mrb[6].mxu1 %vm425_vm1, %v2193_v2  ;;  %vm1045_vm1 = vcmp.lt.s32.totalorder %v2419_v1, 2304 }
 0x15f   : > { %v2301_v10 = vpop.f32.mrb[0].mxu0 }
 0x160   : > { %v2303_v9 = vpop.f32.mrb[0].mxu1  ;;  %v2305_v11 = vpop.f32.mrb[1].mxu0  ;;  %v2391_v59 = vsel %vm1032_vm3, %v2301_v10, -1e+30 }
 0x161   : > { %v1307_v12 = vcombine.low %v2301_v10, %v2305_v11  ;;  %v2309_v13 = vpop.f32.mrb[1].mxu1  ;;  %v2396_v60 = vsel %vm1034_vm4, %v2303_v9, -1e+30  ;;  %v2401_v61 = vsel %vm1033_vm5, %v2305_v11, -1e+30  ;;  %v2446_v10 = vadd.s32 %v2327_v23, %v1014_v58 }
 0x162   : > { %v1308_v14 = vcombine.low %v2303_v9, %v2309_v13  ;;  %v2424_v3 = vsel %vm1035_vm6, %v2309_v13, -1e+30  ;;  %v1065_v9 = vsel %vm1064_vm2, %v2391_v59, -inf  ;;  %vm2758_vm4 = vcmask 3072  }
 0x163   : > { %1323 = vst [vmem:[%s2144_s14] sm:$0xff] %v1307_v12  ;;  %vm1047_vm3 = vcmp.lt.s32.totalorder %v2446_v10, 2304 }
 0x164   : > { %1324 = vst [vmem:[%s2144_s14 + $0x8] sm:$0xff] %v1308_v14  ;;  %v1067_v14 = vsel %vm1064_vm2, %v2396_v60, -inf }
 0x16f   : > { %v637_v15 = vpop.f32.mrb[2].mxu0 }
 0x170   : > { %v2315_v2 = vpop.f32.mrb[2].mxu1  ;;  %v2317_v16 = vpop.f32.mrb[3].mxu0  ;;  %v2384_v57 = vsel %vm1036_vm7, %v637_v15, -1e+30 }
 0x171   : > { %v1309_v17 = vcombine.low %v637_v15, %v2317_v16  ;;  %v2320_v18 = vpop.f32.mrb[3].mxu1  ;;  %v2406_v62 = vsel %vm1038_vm8, %v2315_v2, -1e+30  ;;  %v2411_v63 = vsel %vm1037_vm9, %v2317_v16, -1e+30  ;;  %v1069_v4 = vsel %vm1064_vm2, %v2384_v57, -inf }
 0x172   : > { %v1310_v20 = vcombine.low %v2315_v2, %v2320_v18  ;;  %v2416_v0 = vsel %vm1039_vm10, %v2320_v18, -1e+30  ;;  %v1073_v11 = vsel %vm1064_vm2, %v2406_v62, -inf  ;;  %v1071_v12 = vsel %vm1064_vm2, %v2411_v63, -inf }
 0x173   : > { %1325 = vst [vmem:[%s2144_s14 + $0x10] sm:$0xff] %v1309_v17  ;;  %v1075_v13 = vsel %vm1064_vm2, %v2416_v0, -inf  ;;  %v1066_v15 = vsel %vm1064_vm2, %v2401_v61, -inf  ;;  %v1068_v2 = vsel %vm1064_vm2, %v2424_v3, -inf  ;;  %v1070_v17 = vmax.f32 %v1065_v9, %v1069_v4 }
 0x174   : > { %1326 = vst [vmem:[%s2144_s14 + $0x18] sm:$0xff] %v1310_v20  ;;  %v1074_v21 = vmax.f32 %v1067_v14, %v1073_v11  ;;  %v1072_v22 = vmax.f32 %v1066_v15, %v1071_v12  ;;  %v1076_v23 = vmax.f32 %v1068_v2, %v1075_v13  ;;  %v1948_v14 = vmov 0   ;;  %v2494_v15 = vld [vmem:[#allocation2] sm:$0xf] }
 0x175   : > { %1759 = vset.pattern.permute.xlu0 %v1948_v14 }
 0x17f   : > { %v779_v40 = vpop.f32.mrb[4].mxu0 }
 0x180   : > { %v850_v45 = vpop.f32.mrb[4].mxu1  ;;  %v781_v46 = vpop.f32.mrb[5].mxu0  ;;  %v2430_v5 = vsel %vm1040_vm11, %v779_v40, -1e+30 }
 0x181   : > { %v1311_v49 = vcombine.low %v779_v40, %v781_v46  ;;  %v852_v50 = vpop.f32.mrb[5].mxu1  ;;  %v2435_v6 = vsel %vm1042_vm12, %v850_v45, -1e+30  ;;  %v2439_v7 = vsel %vm1041_vm13, %v781_v46, -1e+30  ;;  %v1077_v16 = vsel %vm1064_vm2, %v2430_v5, -inf }
 0x182   : > { %v1312_v54 = vcombine.low %v850_v45, %v852_v50  ;;  %v2443_v8 = vsel %vm1043_vm14, %v852_v50, -1e+30  ;;  %v1081_v18 = vsel %vm1064_vm2, %v2435_v6, -inf  ;;  %v1079_v19 = vsel %vm1064_vm2, %v2439_v7, -inf }
 0x183   : > { %1327 = vst [vmem:[%s2144_s14 + $0x20] sm:$0xff] %v1311_v49  ;;  %v1083_v20 = vsel %vm1064_vm2, %v2443_v8, -inf  ;;  %v1078_v24 = vmax.f32 %v1070_v17, %v1077_v16  ;;  %v1082_v26 = vmax.f32 %v1074_v21, %v1081_v18  ;;  %v1080_v27 = vmax.f32 %v1072_v22, %v1079_v19 }
 0x184   : > { %1328 = vst [vmem:[%s2144_s14 + $0x28] sm:$0xff] %v1312_v54  ;;  %v1084_v28 = vmax.f32 %v1076_v23, %v1083_v20 }
 0x18f   : > { %v921_v25 = vpop.f32.mrb[6].mxu0 }
 0x190   : > { %v2474_v29 = vsel %vm1044_vm15, %v921_v25, -1e+30  ;;  %v992_v30 = vpop.f32.mrb[6].mxu1  ;;  %v923_v31 = vpop.f32.mrb[7].mxu0 }
 0x191   : > { %v1085_v32 = vsel %vm1064_vm2, %v2474_v29, -inf  ;;  %v2480_v35 = vsel %vm1046_vm0, %v992_v30, -1e+30  ;;  %v2482_v36 = vsel %vm1045_vm1, %v923_v31, -1e+30  ;;  %v1313_v40 = vcombine.low %v921_v25, %v923_v31  ;;  %v994_v45 = vpop.f32.mrb[7].mxu1 }
 0x192   : > { %v1089_v46 = vsel %vm1064_vm2, %v2480_v35, -inf  ;;  %v1087_v49 = vsel %vm1064_vm2, %v2482_v36, -inf  ;;  %v2488_v50 = vsel %vm1047_vm3, %v994_v45, -1e+30  ;;  %v1314_v51 = vcombine.low %v992_v30, %v994_v45 }
 0x193   : > { %v1088_v54 = vmax.f32 %v1080_v27, %v1087_v49  ;;  %1329 = vst [vmem:[%s2144_s14 + $0x30] sm:$0xff] %v1313_v40  ;;  %v1091_v55 = vsel %vm1064_vm2, %v2488_v50, -inf  ;;  %v1086_v58 = vmax.f32 %v1078_v24, %v1085_v32  ;;  %v1090_v4 = vmax.f32 %v1082_v26, %v1089_v46 }
 0x194   : > { %v1092_v9 = vmax.f32 %v1084_v28, %v1091_v55  ;;  %1330 = vst [vmem:[%s2144_s14 + $0x38] sm:$0xff] %v1314_v51 }
 0x195   : > { %v1093_v11 = vmax.f32 %v1086_v58, %v1088_v54 }
 0x196   : > { %v1094_v12 = vmax.f32 %v1090_v4, %v1092_v9 }
 0x198   : > { %v1095_v13 = vmax.f32 %v1093_v11, %v1094_v12 }
 0x19a   : > { %1096 = vmax.xlane.f32.xlu0 %v1095_v13 }
 0x227   : > { %v2496_v2 = vpop.xlane.xlu0 %1096 }
 0x228   : > { %v2500_v16 = vmax.f32 %v2494_v15, %v2496_v2  ;;  %vm1098_vm5 = vcmp.ge.f32.partialorder %v2391_v59, %v2496_v2  ;;  %vm1099_vm6 = vcmp.ge.f32.partialorder %v2401_v61, %v2496_v2  ;;  %vm1100_vm7 = vcmp.ge.f32.partialorder %v2396_v60, %v2496_v2 }
 0x229   : > { %vm1101_vm8 = vcmp.ge.f32.partialorder %v2424_v3, %v2496_v2  ;;  %vm1102_vm9 = vcmp.ge.f32.partialorder %v2384_v57, %v2496_v2  ;;  %vm1103_vm10 = vcmp.ge.f32.partialorder %v2411_v63, %v2496_v2  ;;  %vm1104_vm11 = vcmp.ge.f32.partialorder %v2406_v62, %v2496_v2 }
 0x22a   : > { %1199 = vperm.xlu0 %1759, %v2500_v16   ;;  %v1192_v17 = vsub.f32 %v2494_v15, %v2500_v16  ;;  %1290 = vst.msk [vmem:[#allocation2] sm:$0xf] %vm2758_vm4, %v2500_v16  ;;  %vm1105_vm12 = vcmp.ge.f32.partialorder %v2416_v0, %v2496_v2  ;;  %vm1106_vm13 = vcmp.ge.f32.partialorder %v2430_v5, %v2496_v2  ;;  %v1114_v18 = vsel %vm1098_vm5, %v2330_v33, 2147483647 }
 0x22b   : > { %vm1107_vm14 = vcmp.ge.f32.partialorder %v2439_v7, %v2496_v2  ;;  %vm1108_vm15 = vcmp.ge.f32.partialorder %v2435_v6, %v2496_v2  ;;  %vm1109_vm0 = vcmp.ge.f32.partialorder %v2443_v8, %v2496_v2  ;;  %vm1110_vm1 = vcmp.ge.f32.partialorder %v2474_v29, %v2496_v2 }
 0x22c   : > { %vm1111_vm3 = vcmp.ge.f32.partialorder %v2482_v36, %v2496_v2  ;;  %vm1112_vm4 = vcmp.ge.f32.partialorder %v2480_v35, %v2496_v2  ;;  %v1115_v19 = vsel %vm1099_vm6, %v2336_v37, 2147483647  ;;  %v1116_v20 = vsel %vm1100_vm7, %v2333_v34, 2147483647 }
 0x22d   : > { %v1117_v21 = vsel %vm1101_vm8, %v2339_v38, 2147483647  ;;  %vm1113_vm5 = vcmp.ge.f32.partialorder %v2488_v50, %v2496_v2  ;;  %v1118_v33 = vsel %vm1102_vm9, %v2342_v39, 2147483647  ;;  %v1119_v37 = vsel %vm1103_vm10, %v2348_v42, 2147483647 }
 0x22e   : > { %v1120_v34 = vsel %vm1104_vm11, %v2345_v41, 2147483647  ;;  %v1121_v38 = vsel %vm1105_vm12, %v2351_v43, 2147483647  ;;  %v1122_v39 = vsel %vm1106_vm13, %v2354_v44, 2147483647 }
 0x22f   : > { %v1123_v42 = vsel %vm1107_vm14, %v2360_v48, 2147483647  ;;  %v1124_v41 = vsel %vm1108_vm15, %v2357_v47, 2147483647  ;;  %v1125_v43 = vsel %vm1109_vm0, %v2365_v52, 2147483647 }
 0x230   : > { %v1126_v44 = vsel %vm1110_vm1, %v2368_v53, 2147483647  ;;  %v1127_v48 = vsel %vm1111_vm3, %v2419_v1, 2147483647  ;;  %v1128_v22 = vsel %vm1112_vm4, %v2382_v56, 2147483647 }
 0x231   : > { %v1129_v23 = vsel %vm1113_vm5, %v2446_v10, 2147483647  ;;  %v1130_v47 = vsel %vm1064_vm2, %v1114_v18, 2147483647  ;;  %v1131_v24 = vsel %vm1064_vm2, %v1115_v19, 2147483647 }
 0x232   : > { %v1132_v52 = vsel %vm1064_vm2, %v1116_v20, 2147483647  ;;  %v1133_v25 = vsel %vm1064_vm2, %v1117_v21, 2147483647  ;;  %v1134_v26 = vsel %vm1064_vm2, %v1118_v33, 2147483647 }
 0x233   : > { %v1137_v53 = vsel %vm1064_vm2, %v1119_v37, 2147483647  ;;  %vm1135_vm6 = vcmp.lt.s32.totalorder %v1130_v47, %v1134_v26  ;;  %v1140_v1 = vsel %vm1064_vm2, %v1120_v34, 2147483647  ;;  %v1143_v56 = vsel %vm1064_vm2, %v1121_v38, 2147483647 }
 0x234   : > { %vm1138_vm7 = vcmp.lt.s32.totalorder %v1131_v24, %v1137_v53  ;;  %v1136_v27 = vsel %vm1135_vm6, %v1130_v47, %v1134_v26  ;;  %vm1141_vm4 = vcmp.lt.s32.totalorder %v1132_v52, %v1140_v1  ;;  %vm1144_vm8 = vcmp.lt.s32.totalorder %v1133_v25, %v1143_v56 }
 0x235   : > { %v1139_v10 = vsel %vm1138_vm7, %v1131_v24, %v1137_v53  ;;  %v1142_v28 = vsel %vm1141_vm4, %v1132_v52, %v1140_v1  ;;  %v1145_v30 = vsel %vm1144_vm8, %v1133_v25, %v1143_v56  ;;  %v1146_v31 = vsel %vm1064_vm2, %v1122_v39, 2147483647 }
 0x236   : > { %v1149_v32 = vsel %vm1064_vm2, %v1123_v42, 2147483647  ;;  %vm1147_vm9 = vcmp.lt.s32.totalorder %v1136_v27, %v1146_v31  ;;  %v1152_v40 = vsel %vm1064_vm2, %v1124_v41, 2147483647  ;;  %v1155_v45 = vsel %vm1064_vm2, %v1125_v43, 2147483647 }
 0x237   : > { %vm1150_vm10 = vcmp.lt.s32.totalorder %v1139_v10, %v1149_v32  ;;  %v1148_v46 = vsel %vm1147_vm9, %v1136_v27, %v1146_v31  ;;  %vm1153_vm11 = vcmp.lt.s32.totalorder %v1142_v28, %v1152_v40  ;;  %vm1156_vm12 = vcmp.lt.s32.totalorder %v1145_v30, %v1155_v45 }
 0x238   : > { %v1151_v49 = vsel %vm1150_vm10, %v1139_v10, %v1149_v32  ;;  %v1154_v51 = vsel %vm1153_vm11, %v1142_v28, %v1152_v40  ;;  %v1157_v54 = vsel %vm1156_vm12, %v1145_v30, %v1155_v45  ;;  %v1158_v55 = vsel %vm1064_vm2, %v1126_v44, 2147483647 }
 0x239   : > { %v1161_v58 = vsel %vm1064_vm2, %v1127_v48, 2147483647  ;;  %vm1159_vm13 = vcmp.lt.s32.totalorder %v1148_v46, %v1158_v55  ;;  %v1164_v4 = vsel %vm1064_vm2, %v1128_v22, 2147483647  ;;  %v1167_v9 = vsel %vm1064_vm2, %v1129_v23, 2147483647 }
 0x23a   : > { %vm1162_vm14 = vcmp.lt.s32.totalorder %v1151_v49, %v1161_v58  ;;  %v1160_v11 = vsel %vm1159_vm13, %v1148_v46, %v1158_v55  ;;  %vm1165_vm15 = vcmp.lt.s32.totalorder %v1154_v51, %v1164_v4  ;;  %vm1168_vm0 = vcmp.lt.s32.totalorder %v1157_v54, %v1167_v9 }
 0x23b   : > { %v1163_v12 = vsel %vm1162_vm14, %v1151_v49, %v1161_v58  ;;  %v1166_v13 = vsel %vm1165_vm15, %v1154_v51, %v1164_v4  ;;  %v1169_v14 = vsel %vm1168_vm0, %v1157_v54, %v1167_v9  ;;  %vm1286_vm7 = vcmp.gt.f32.partialorder %v2496_v2, %v2494_v15 }
 0x23c   : > { %vm1170_vm1 = vcmp.lt.s32.totalorder %v1160_v11, %v1163_v12  ;;  %vm1172_vm3 = vcmp.lt.s32.totalorder %v1166_v13, %v1169_v14  ;;  %vm2774_vm8 = vcmask (!%p1542_p12), 3072  }
 0x23d   : > { %v1171_v18 = vsel %vm1170_vm1, %v1160_v11, %v1163_v12  ;;  %v1173_v19 = vsel %vm1172_vm3, %v1166_v13, %v1169_v14  ;;  %vm2775_vm9 = vmmov (!%p1542_p12), %vm2774_vm8 }
 0x23e   : > { %vm1174_vm5 = vcmp.lt.s32.totalorder %v1171_v18, %v1173_v19 }
 0x23f   : > { %v2613_v20 = vsel %vm1174_vm5, %v1171_v18, %v1173_v19 }
 0x240   : > { %v1177_v21 = vshra.s32 %v2613_v20, 16 }
 0x242   : > { %v2616_v33 = vcvt.s32.f32 %v1177_v21 }
 0x244   : > { %1180 = vmin.xlane.f32.xlu1 %v2616_v33 }
 0x2a9   : > { %v2619_v37 = vpop.permute.xlu0 %1199 }
 0x2aa   : > { %v1202_v34 = vsub.f32 %v2391_v59, %v2619_v37  ;;  %v1203_v38 = vsub.f32 %v2401_v61, %v2619_v37  ;;  %v1204_v39 = vsub.f32 %v2396_v60, %v2619_v37  ;;  %v1205_v42 = vsub.f32 %v2424_v3, %v2619_v37 }
 0x2ab   : > { %v1206_v41 = vsub.f32 %v2384_v57, %v2619_v37  ;;  %v1207_v22 = vsub.f32 %v2411_v63, %v2619_v37  ;;  %v1208_v59 = vsub.f32 %v2406_v62, %v2619_v37  ;;  %v1209_v60 = vsub.f32 %v2416_v0, %v2619_v37 }
 0x2ac   : > { %v1218_v43 = vmul.f32 1.442695, %v1202_v34  ;;  %v1220_v44 = vmul.f32 1.442695, %v1203_v38  ;;  %v1222_v48 = vmul.f32 1.442695, %v1204_v39  ;;  %v1210_v57 = vsub.f32 %v2430_v5, %v2619_v37 }
 0x2ad   : > { %v1224_v23 = vmul.f32 1.442695, %v1205_v42  ;;  %v1226_v61 = vmul.f32 1.442695, %v1206_v41  ;;  %v1228_v3 = vmul.f32 1.442695, %v1207_v22  ;;  %v1211_v63 = vsub.f32 %v2439_v7, %v2619_v37 }
 0x2ae   : > { %1760 = vpow2.f32 %v1218_v43  ;;  %v1230_v47 = vmul.f32 1.442695, %v1208_v59  ;;  %v1232_v24 = vmul.f32 1.442695, %v1209_v60  ;;  %v1212_v62 = vsub.f32 %v2435_v6, %v2619_v37 }
 0x2af   : > { %1762 = vpow2.f32 %v1220_v44  ;;  %v1234_v52 = vmul.f32 1.442695, %v1210_v57  ;;  %v1213_v0 = vsub.f32 %v2443_v8, %v2619_v37  ;;  %v1236_v53 = vmul.f32 1.442695, %v1211_v63 }
 0x2b0   : > { %1764 = vpow2.f32 %v1222_v48  ;;  %v1214_v27 = vsub.f32 %v2474_v29, %v2619_v37  ;;  %v1238_v6 = vmul.f32 1.442695, %v1212_v62  ;;  %v1215_v8 = vsub.f32 %v2482_v36, %v2619_v37 }
 0x2b1   : > { %1766 = vpow2.f32 %v1224_v23  ;;  %v1240_v31 = vmul.f32 1.442695, %v1213_v0  ;;  %v1216_v46 = vsub.f32 %v2480_v35, %v2619_v37  ;;  %v1217_v55 = vsub.f32 %v2488_v50, %v2619_v37 }
 0x2b2   : > { %1768 = vpow2.f32 %v1226_v61  ;;  %v1242_v29 = vmul.f32 1.442695, %v1214_v27  ;;  %v1244_v36 = vmul.f32 1.442695, %v1215_v8  ;;  %v1176_v43 = vand.u32 65535, %v2613_v20 }
 0x2b3   : > { %1770 = vpow2.f32 %v1228_v3  ;;  %v1246_v11 = vmul.f32 1.442695, %v1216_v46  ;;  %v1248_v14 = vmul.f32 1.442695, %v1217_v55 }
 0x2b4   : > { %1772 = vpow2.f32 %v1230_v47  ;;  %v1178_v3 = vcvt.s32.f32 %v1176_v43 }
 0x2b5   : > { %1774 = vpow2.f32 %v1232_v24 }
 0x2b6   : > { %1776 = vpow2.f32 %v1234_v52 }
 0x2b7   : > { %1778 = vpow2.f32 %v1236_v53 }
 0x2b8   : > { %v1761_v25 = vpop.eup %1760  ;;  %1780 = vpow2.f32 %v1238_v6  ;;  %v1287_v6 = vld [vmem:[#allocation4] sm:$0xf] }
 0x2b9   : > { %v1763_v26 = vpop.eup %1762  ;;  %v1250_v5 = vsel %vm1064_vm2, %v1761_v25, 0.0  ;;  %1782 = vpow2.f32 %v1240_v31 }
 0x2ba   : > { %v1765_v1 = vpop.eup %1764  ;;  %v1251_v56 = vsel %vm1064_vm2, %v1763_v26, 0.0  ;;  %1784 = vpow2.f32 %v1242_v29 }
 0x2bb   : > { %v1767_v7 = vpop.eup %1766  ;;  %v1252_v10 = vadd.f32 %v1251_v56, %v1250_v5  ;;  %v1253_v28 = vsel %vm1064_vm2, %v1765_v1, 0.0  ;;  %1786 = vpow2.f32 %v1244_v36  ;;  %v1193_v5 = vmul.f32 1.442695, %v1192_v17 }
 0x2bc   : > { %v1769_v30 = vpop.eup %1768  ;;  %v1255_v40 = vsel %vm1064_vm2, %v1767_v7, 0.0  ;;  %1788 = vpow2.f32 %v1246_v11 }
 0x2bd   : > { %v1254_v32 = vadd.f32 %v1253_v28, %v1252_v10  ;;  %v1771_v45 = vpop.eup %1770  ;;  %v1257_v51 = vsel %vm1064_vm2, %v1769_v30, 0.0  ;;  %1790 = vpow2.f32 %v1248_v14  ;;  %v1195_v10 = vld [vmem:[#allocation3] sm:$0xf] }
 0x2be   : > { %v1773_v54 = vpop.eup %1772  ;;  %v1259_v4 = vsel %vm1064_vm2, %v1771_v45, 0.0  ;;  %1792 = vpow2.f32 %v1193_v5 }
 0x2bf   : > { %v1256_v49 = vadd.f32 %v1255_v40, %v1254_v32  ;;  %v1775_v9 = vpop.eup %1774  ;;  %v1261_v35 = vsel %vm1064_vm2, %v1773_v54, 0.0 }
 0x2c0   : > { %v1777_v13 = vpop.eup %1776  ;;  %v1263_v19 = vsel %vm1064_vm2, %v1775_v9, 0.0 }
 0x2c1   : > { %v1258_v58 = vadd.f32 %v1257_v51, %v1256_v49  ;;  %v1779_v21 = vpop.eup %1778  ;;  %v1265_v37 = vsel %vm1064_vm2, %v1777_v13, 0.0 }
 0x2c2   : > { %v1781_v34 = vpop.eup %1780  ;;  %v1267_v39 = vsel %vm1064_vm2, %v1779_v21, 0.0 }
 0x2c3   : > { %v1260_v12 = vadd.f32 %v1259_v4, %v1258_v58  ;;  %v1783_v42 = vpop.eup %1782  ;;  %v1269_v44 = vsel %vm1064_vm2, %v1781_v34, 0.0 }
 0x2c4   : > { %v1785_v48 = vpop.eup %1784  ;;  %v1271_v23 = vsel %vm1064_vm2, %v1783_v42, 0.0 }
 0x2c5   : > { %v1262_v18 = vadd.f32 %v1261_v35, %v1260_v12  ;;  %v1787_v59 = vpop.eup %1786  ;;  %v1273_v57 = vsel %vm1064_vm2, %v1785_v48, 0.0 }
 0x2c6   : > { %v1789_v47 = vpop.eup %1788  ;;  %v1275_v62 = vsel %vm1064_vm2, %v1787_v59, 0.0 }
 0x2c7   : > { %v1264_v50 = vadd.f32 %v1263_v19, %v1262_v18  ;;  %v1791_v20 = vpop.eup %1790  ;;  %v1277_v25 = vsel %vm1064_vm2, %v1789_v47, 0.0 }
 0x2c8   : > { %v1279_v0 = vsel %vm1064_vm2, %v1791_v20, 0.0  ;;  %v1793_v27 = vpop.eup %1792  ;;  %vm2772_vm2 = vcmask 3072  }
 0x2c9   : > { %v1266_v38 = vadd.f32 %v1265_v37, %v1264_v50  ;;  %v1196_v8 = vmul.f32 %v1793_v27, %v1195_v10  ;;  %vm2773_vm4 = vmmov %vm2772_vm2 }
 0x2cb   : > { %v1268_v41 = vadd.f32 %v1267_v39, %v1266_v38 }
 0x2cd   : > { %v1270_v22 = vadd.f32 %v1269_v44, %v1268_v41 }
 0x2cf   : > { %v1272_v61 = vadd.f32 %v1271_v23, %v1270_v22 }
 0x2d1   : > { %v1181_v60 = vpop.xlane.xlu1 %1180  ;;  %v1274_v63 = vadd.f32 %v1273_v57, %v1272_v61 }
 0x2d2   : > { %vm1182_vm6 = vcmp.eq.f32.partialorder %v2616_v33, %v1181_v60  ;;  %v1187_v33 = vcvt.f32.s32 %v1181_v60 }
 0x2d3   : > { %v1183_v24 = vsel %vm1182_vm6, %v1178_v3, inf  ;;  %v1276_v52 = vadd.f32 %v1275_v62, %v1274_v63 }
 0x2d4   : > { %1184 = vmin.xlane.f32.xlu1 %v1183_v24  ;;  %v1188_v56 = vshll.u32 %v1187_v33, 16 }
 0x2d5   : > { %v1278_v26 = vadd.f32 %v1277_v25, %v1276_v52 }
 0x2d7   : > { %v1280_v53 = vadd.f32 %v1279_v0, %v1278_v26 }
 0x2d9   : > { %1281 = vadd.xlane.f32.xlu1 %v1280_v53 }
 0x361   : > { %v1185_v1 = vpop.xlane.xlu1 %1184 }
 0x362   : > { %v1186_v7 = vcvt.f32.s32 %v1185_v1 }
 0x363   : > { %1334 = sbr.rel (%p1542_p12) target bundleno = 893 (0x37d), region = 44 }
 0x364   : > { %v1189_v28 = vadd.s32 %v1188_v56, %v1186_v7 }
 0x366   : > { %v1288_v30 = vsel %vm1286_vm7, %v1189_v28, %v1287_v6  ;;  %v1282_v31 = vpop.xlane.xlu1 %1281 }
 0x367   : > { %1289 = vst.msk [vmem:[#allocation4] sm:$0xf] %vm2772_vm2, %v1288_v30  ;;  %v1283_v32 = vadd.f32 %v1282_v31, %v1196_v8 }
 0x369   : > { %1285 = vst.msk [vmem:[#allocation3] sm:$0xf] %vm2773_vm4, %v1283_v32 }
 0x36e   : > { %v1339_v17 = vld [vmem:[#allocation4] sm:$0xf] }
 0x36f   : > { %1340 = vst.msk [vmem:[%s2753_s4] sm:$0xf] %vm2774_vm8, %v1339_v17 }
 0x370   : > { %v1335_v16 = vld [vmem:[#allocation3] sm:$0xf] }
 0x371   : > { %1794 = vrcp.f32 %v1335_v16 }
 0x37b   : > { %v1795_v15 = vpop.eup %1794 }
 0x37c   : > { %1338 = vst.msk [vmem:[%s2752_s3] sm:$0xf] %vm2775_vm9, %v1795_v15 }
 0x37d PF: > { %s1342_s21 = scalar_lea.sflag [#allocation7], %s2133_s22  ;;  %p2776_p13 = scmp.ne.s32.totalorder %s2763_s29, 0 }
 0x37e   : > { %s1544_s24 = sshll.u32 (%p2776_p13), %s1930_s18, 4 }
 0x37f   : > { %1356 = sbr.rel (!%p2776_p13) target bundleno = 929 (0x3a1), region = 48  ;;  %s1358_s12 = ssub.s32 (%p2776_p13), 18, %s1544_s24 }
 0x380   : > { %p1359_p1 = scmp.lt.s32.totalorder (%p2776_p13), %s1358_s12, 16 }
 0x386   : > { %s2788_s12 = smov (!%p1359_p1, %s1358_s12), 16 }
 0x387   : > { %s2691_s8 = sshll.u32 %s2788_s12, 6 }
 0x388   : > { %s1363_s0 = ssub.s32 1024, %s2691_s8 }
 0x389   : > { %1364 = vsyncadd %s1342_s21, %s1363_s0  ;;  %p1546_p7 = scmp.ne.s32.totalorder %s2691_s8, 0  ;;  %s1557_s29 = sshll.u32 %s1930_s18, 10 }
 0x38a   : > { %s2701_s13 = scalar_lea.hbm %s2751_s2, %s1557_s29  ;;  %s1372_s9 = sshll.u32 %s2144_s14, 4  ;;  %s1373_s9 = int_to_ptr.vmem [resolvable:$true] %s1372_s9 }
 0x38b   : > { %s1852_s6 = scalar_lea.vmem %s1373_s9, %s2691_s8  ;;  %s1949_s26 = smov [#allocation10]  }
 0x38c   : > { %p1853_p4 = scmp.ne.s32.totalorder %s1373_s9, %s1852_s6  ;;  %s1856_s28 = sshll.u32 %s1949_s26, 4  ;;  %s1857_s28 = int_to_ptr.vmem [resolvable:$false] %s1856_s28 }
 0x38d   : > { %s1858_s27 = scalar_lea.vmem %s1857_s28, 2048  ;;  %p1859_p0 = scmp.lt.s32.totalorder %s1373_s9, %s1857_s28 }
 0x38e   : > { %p1854_p8 = pnand %p1853_p4, %p1546_p7  ;;  %p1860_p2 = scmp.lt.s32.totalorder %s1858_s27, %s1852_s6 }
 0x390   : > { %p1855_p9 = pneg %p1854_p8  ;;  %p1861_p11 = por %p1860_p2, %p1859_p0 }
 0x392   : > { %p1862_p6 = pnand %p1861_p11, %p1855_p9 }
 0x394   : > { %1865 = shalt.err (!%p1862_p6)
}
 0x395   : > { %s1866_s18 = scalar_lea.hbm %s2701_s13, %s2691_s8  ;;  %s1870_s10 = scalar_lea.hbm %s2751_s2, 1152 }
 0x396   : > { %p1867_p5 = scmp.ne.s32.totalorder %s2701_s13, %s1866_s18  ;;  %p1871_p13 = scmp.lt.u32.totalorder %s2701_s13, %s2751_s2 }
 0x397   : > { %p1872_p1 = scmp.lt.u32.totalorder %s1870_s10, %s1866_s18  ;;  %p1874_p8 = scmp.lt.u32.totalorder %s1866_s18, %s2701_s13 }
 0x398   : > { %p1868_p10 = pnand %p1867_p5, %p1546_p7 }
 0x399   : > { %p1873_p4 = por %p1872_p1, %p1871_p13 }
 0x39a   : > { %p1869_p12 = pneg %p1868_p10 }
 0x39b   : > { %p1875_p9 = por %p1874_p8, %p1873_p4 }
 0x39d   : > { %p1876_p0 = pnand %p1875_p9, %p1869_p12 }
 0x39f   : > { %1879 = shalt.err (!%p1876_p0)
}
 0x3a0   : > { %1375 = dma.vmem_to_hbm [thread:$0]  (%p1546_p7), %s1373_s9, %s2691_s8, %s2701_s13, %s1342_s21  }
 0x3a1 PF: > { %s1404_s0 = sand.u32 1, %s1918_s15   ;;  %p2777_p2 = scmp.ne.s32.totalorder %s2764_s5, 0 }
 0x3a2   : > { %s1405_s29 = scalar_lea.sflag [#allocation7], %s1404_s0 }
 0x3a3   : > { %p1697_p11 = pnand %p1519_p3, %p2777_p2 }
 0x3a5   : > { %1913 = dma.done.wait (!%p1697_p11), %s1405_s29, 1024  }
 0x3a6   : > { %1915 = vsyncadd (!%p1697_p11), %s1405_s29, 4294966272  ;;  %s22_s20 = sadd.s32 1, %s1938_s20   ;;  %s2778_s15 = smov %s1922_s16 }
 0x3a7   : > { %p19_p6 = scmp.ge.s32.totalorder %s22_s20, 4   ;;  %s2779_s16 = smov %s1926_s17 }
 0x3a8   : > { %s2780_s17 = smov %s2037_s30  ;;  %s2781_s18 = smov %s1934_s19 }
 0x3a9   : > { %s2782_s19 = smov %s2784_s23  ;;  %21 = sbr.rel (!%p19_p6) target bundleno = 9 (0x9), region = 111 }
 0x3b0   :  { %1410 = vsyncpa [#allocation6], 1 }
 0x3b1   :  { %1412 = vsyncpa [#allocation6 + $0x1], 1 }
 0x3b2   :  { %1413 = vsyncpa [#allocation9], 1 }
 0x3b3   :  { %1415 = vsyncpa [#allocation9 + $0x1], 1 }
 0x3b4   :  { %1416 = vsyncpa [#allocation7], 1 }
 0x3b5   :  { %1418 = vsyncpa [#allocation7 + $0x1], 1 }

</bundles_post_ra>
